<compile_context>
chip_gen: v6e
topology: v6e:2x2x1
jax: 0.10.0
libtpu: 0.0.40
codegen_flags: <defaults>
</compile_context>

<pallas_src>
import functools

import jax
import jax.numpy as jnp
from jax.experimental import pallas as pl
from jax.experimental.pallas import tpu as pltpu


# -----------------------------------------------------------------------------
# Fused Pallas kernel
# -----------------------------------------------------------------------------

def _fused_attention_kernel(coords_ref, phi_ref, g_ref, o_ref, *,
                            H, W, patch, window, c, Wpp, M):
    """Fused SpatialWeightsEsDot + attention-weighted aggregation of g.

    Flat, lane-dense layouts (trailing axis = flattened padded spatial dim):
      coords_ref : (2, N_o)    int32  row 0 = y, row 1 = x (= col - e) per output lane
      phi_ref    : (aux_c, Lf) f32    phi = conv1x1(f), zero-padded by e = pp2+ws2,
                                      flattened row-major (row stride Wpp) with an
                                      extra M-lane zero margin at both ends
      g_ref      : (c, Lf)     f32    g = conv1x1(u), same padded flat layout
      o_ref      : (c, N_o)    f32    output rows y in [0,H) at all Wpp padded columns
                                      (the e junk columns per row are cropped outside)
    """
    pp2 = patch // 2
    ws2 = window // 2
    e = pp2 + ws2
    N_o = H * Wpp                       # lane-dense output slab
    N_r = N_o + 2 * pp2 * Wpp           # + patch halo rows
    N_c = N_r + 2 * pp2                 # + patch halo cols
    P0 = M + e * Wpp                    # flat offset of output row 0, padded col 0
    Q0 = P0 - pp2 * Wpp - pp2           # flat offset of the correlation domain

    y_idx = coords_ref[0:1, :]          # (1, N_o) int32
    x_idx = coords_ref[1:2, :]

    # Patch-centre slab, hoisted: reused for every window offset.
    center = phi_ref[:, Q0:Q0 + N_c]    # (aux_c, N_c)

    # Online-softmax state over the K = window*window offsets.
    m = jnp.full((1, N_o), -jnp.inf, dtype=jnp.float32)
    l = jnp.zeros((1, N_o), dtype=jnp.float32)
    acc = jnp.zeros((c, N_o), dtype=jnp.float32)

    for wi in range(window):
        dy = wi - ws2
        for wj in range(window):
            dx = wj - ws2
            s = dy * Wpp + dx           # static flat lane shift of this window offset

            # Channel-reduced cross-correlation of phi with its shifted copy.
            shifted = phi_ref[:, Q0 + s:Q0 + s + N_c]                    # (aux_c, N_c)
            corr = jnp.sum(center * shifted, axis=0, keepdims=True)      # (1, N_c)

            # Separable patch box-sum (cols then rows): 2*(patch-1) adds/offset
            # instead of patch^2-1; static lane slices -> XLU rotations only.
            row = corr[:, 0:N_r]
            for kj in range(1, patch):
                row = row + corr[:, kj:kj + N_r]
            logit = row[:, 0:N_o]
            for ki in range(1, patch):
                logit = logit + row[:, ki * Wpp:ki * Wpp + N_o]

            # Out-of-image window neighbours contribute an all-zero patch vector
            # in the reference (the second F.unfold zero pads) -> logit exactly 0.
            valid = ((y_idx >= -dy) & (y_idx <= (H - 1) - dy) &
                     (x_idx >= -dx) & (x_idx <= (W - 1) - dx))
            logit = jnp.where(valid, logit, 0.0)

            # Online softmax update + attention-weighted g aggregation.
            # (g_ref is zero-padded, so out-of-image neighbours add zero g.)
            m_new = jnp.maximum(m, logit)
            alpha = jnp.exp(m - m_new)
            p = jnp.exp(logit - m_new)
            l = l * alpha + p
            g_shift = g_ref[:, P0 + s:P0 + s + N_o]                      # (c, N_o)
            acc = acc * alpha + p * g_shift
            m = m_new

    # Exact reciprocal so the test validates tightly; use
    # pl.reciprocal(l, approx=True) if the EUP approximation is acceptable.
    o_ref[...] = acc * (1.0 / l)


# -----------------------------------------------------------------------------
# Module forward (wrapper)
# -----------------------------------------------------------------------------

def self_attention_es_dot_forward(u, f, w_phi, w_g, *, patch_size, window_size):
    """u: (b, c, h, w), f: (b, aux_c, h, w)  ->  (b, c, h, w, 1)."""
    b, c, h, w = u.shape
    aux_c = f.shape[1]
    pp2 = patch_size // 2
    ws2 = window_size // 2
    e = pp2 + ws2
    wpp = w + 2 * e
    hpp = h + 2 * e
    npp = hpp * wpp
    margin = wpp                         # >= e: every shifted slice stays inside the ref
    lf = npp + 2 * margin
    n_o = h * wpp

    # 1x1 convs are tiny contractions; XLA fuses them with the zero-padding, so
    # they stay in the wrapper (folding into the kernel left as TODO above).
    # Note: theta = self.phi(f) in the reference -> the theta weights are unused.
    hp = jax.lax.Precision.HIGHEST
    phi = jnp.einsum('oi,bihw->bohw', w_phi, f, precision=hp)
    g = jnp.einsum('oi,bihw->bohw', w_g, u, precision=hp)

    def pad_and_flatten(x):
        xp = jnp.pad(x, ((0, 0), (0, 0), (e, e), (e, e)))
        xf = xp.reshape(b, x.shape[1], npp)
        return jnp.pad(xf, ((0, 0), (0, 0), (margin, margin)))

    phi_flat = pad_and_flatten(phi)      # (b, aux_c, lf)
    g_flat = pad_and_flatten(g)          # (b, c, lf)

    # Per-output-lane (y, x) coordinates for the border masks (batch independent).
    y_idx = jnp.repeat(jnp.arange(h, dtype=jnp.int32), wpp)
    x_idx = jnp.tile(jnp.arange(wpp, dtype=jnp.int32) - e, h)
    coords = jnp.stack([y_idx, x_idx], axis=0)           # (2, n_o)

    kernel = functools.partial(
        _fused_attention_kernel, H=h, W=w, patch=patch_size,
        window=window_size, c=c, Wpp=wpp, M=margin)

    out_flat = pl.pallas_call(
        kernel,
        out_shape=jax.ShapeDtypeStruct((b, c, n_o), jnp.float32),
        grid=(b,),
        in_specs=[
            pl.BlockSpec((2, n_o), lambda i: (0, 0)),
            pl.BlockSpec((None, aux_c, lf), lambda i: (i, 0, 0)),
            pl.BlockSpec((None, c, lf), lambda i: (i, 0, 0)),
        ],
        out_specs=pl.BlockSpec((None, c, n_o), lambda i: (i, 0, 0)),
        compiler_params=pltpu.CompilerParams(
            dimension_semantics=("parallel",),        # batch shards across v7x's 2 TCs
            vmem_limit_bytes=48 * 1024 * 1024),       # > v5e/v6e defaults, < v7x 64 MiB
    )(coords, phi_flat, g_flat)

    # Crop the e-wide junk columns of each row; the trailing singleton axis is
    # the reference's final permute(0,4,1,2,3).
    out = out_flat.reshape(b, c, h, wpp)[:, :, :, e:e + w]
    return out[..., None]                             # (b, c, h, w, 1)


# -----------------------------------------------------------------------------
# Pure-JAX reference (same math, no Pallas) for the correctness check
# -----------------------------------------------------------------------------

def extract_patches_nchw(x, k):
    """x: (b, c, h, w) -> (b, h, w, c*k*k), F.unfold element order, zero pad k//2."""
    b, c, h, w = x.shape
    pad = k // 2
    xp = jnp.pad(x, ((0, 0), (0, 0), (pad, pad), (pad, pad)))
    slices = []
    for ki in range(k):
        for kj in range(k):
            slices.append(xp[:, :, ki:ki + h, kj:kj + w])
    p = jnp.stack(slices, axis=2)                              # (b, c, k*k, h, w)
    p = jnp.transpose(p, (0, 3, 4, 1, 2))                      # (b, h, w, c, k*k)
    return p.reshape(b, h, w, c * k * k)


def window_shift_nhwd(x, ws):
    """x: (b, h, w, D) -> (K, b, h, w, D) window-shifted copies, zero padded."""
    b, h, w, dd = x.shape
    pad = ws // 2
    xp = jnp.pad(x, ((0, 0), (pad, pad), (pad, pad), (0, 0)))
    outs = []
    for wi in range(ws):
        for wj in range(ws):
            outs.append(xp[:, wi:wi + h, wj:wj + w, :])
    return jnp.stack(outs, axis=0)


def reference_forward(u, f, w_phi, w_g, *, patch_size, window_size):
    hp = jax.lax.Precision.HIGHEST
    b, c, h, w = u.shape
    aux_c = f.shape[1]
    n = b * h * w
    K = window_size * window_size
    f_flat = jnp.transpose(f, (0, 2, 3, 1)).reshape(n, aux_c)
    phi_flat = jnp.matmul(f_flat, w_phi.T, precision=hp)
    phi_nchw = jnp.transpose(phi_flat.reshape(b, h, w, aux_c), (0, 3, 1, 2))
    t_nhwd = extract_patches_nchw(phi_nchw, patch_size)
    d = t_nhwd.shape[-1]
    t_flat = t_nhwd.reshape(n, d)
    phi_sh = window_shift_nhwd(t_nhwd, window_size).reshape(K, n, d)
    u_flat = jnp.transpose(u, (0, 2, 3, 1)).reshape(n, c)
    g_flat = jnp.matmul(u_flat, w_g.T, precision=hp)
    g_sh = window_shift_nhwd(g_flat.reshape(b, h, w, c), window_size).reshape(K, n, c)
    att = jnp.einsum('nd,knd->nk', t_flat, phi_sh, precision=hp)
    att = jax.nn.softmax(att, axis=-1)
    out_flat = jnp.einsum('nk,knc->nc', att, g_sh, precision=hp)
    out = jnp.transpose(out_flat.reshape(b, h, w, c), (0, 3, 1, 2))[..., None]
    return out


# -----------------------------------------------------------------------------

if __name__ == "__main__":
    B, C, H, W = 2, 4, 16, 16
    AUX_C = C
    PATCH, WIN = 3, 3

    key = jax.random.PRNGKey(0)
    k_u, k_f, k_phi, k_theta, k_g = jax.random.split(key, 5)

    u = jax.random.normal(k_u, (B, C, H, W), jnp.float32)
    f = jax.random.normal(k_f, (B, AUX_C, H, W), jnp.float32)

    # Conv2d(.., .., 1, bias=False) -> weight layout (out, in).
    w_phi = 0.1 * jax.random.normal(k_phi, (AUX_C, AUX_C), jnp.float32)
    w_theta = 0.1 * jax.random.normal(k_theta, (AUX_C, AUX_C), jnp.float32)  # unused (reference quirk)
    w_g = 0.1 * jax.random.normal(k_g, (C, C), jnp.float32)

    fwd = jax.jit(functools.partial(
        self_attention_es_dot_forward, patch_size=PATCH, window_size=WIN))
    out = jax.block_until_ready(fwd(u, f, w_phi, w_g))

    ref = reference_forward(u, f, w_phi, w_g, patch_size=PATCH, window_size=WIN)
    assert out.shape == (B, C, H, W, 1), out.shape
    # Exact f32 math everywhere (no approx reciprocal) -> tight tolerance.
    assert jnp.allclose(out, ref, rtol=1e-4, atol=1e-4), "mismatch vs reference"

    print("KERNEL_OK")
</pallas_src>

<mosaic_0001>
module attributes {stable_mosaic.version = 11 : i64} {
  func.func @_fused_attention_kernel(%arg0: i32, %arg1: memref<2x320xi32, #tpu.memory_space<vmem>>, %arg2: memref<1x4x440xf32, #tpu.memory_space<vmem>>, %arg3: memref<1x4x440xf32, #tpu.memory_space<vmem>>, %arg4: memref<1x4x320xf32, #tpu.memory_space<vmem>>) attributes {dimension_semantics = [#tpu.dimension_semantics<parallel>], iteration_bounds = array<i64: 2>, scalar_prefetch = 0 : i64, scratch_operands = 0 : i64, tpu.core_type = #tpu.core_type<tc>, window_params = [{pipeline_mode = #tpu.pipeline_mode<synchronous>, transform_indices = @transform_0, window_bounds = array<i64: 2, 320>}, {transform_indices = @transform_1, window_bounds = array<i64: 1, 4, 440>}, {transform_indices = @transform_2, window_bounds = array<i64: 1, 4, 440>}, {transform_indices = @transform_3, window_bounds = array<i64: 1, 4, 320>}]} {
    %c0 = arith.constant 0 : index
    %c0_0 = arith.constant 0 : index
    %0 = vector.load %arg1[%c0, %c0_0] : memref<2x320xi32, #tpu.memory_space<vmem>>, vector<1x320xi32>
    %c1 = arith.constant 1 : index
    %c0_1 = arith.constant 0 : index
    %1 = vector.load %arg1[%c1, %c0_1] : memref<2x320xi32, #tpu.memory_space<vmem>>, vector<1x320xi32>
    %c0_2 = arith.constant 0 : index
    %c0_3 = arith.constant 0 : index
    %c39 = arith.constant 39 : index
    %2 = vector.load %arg2[%c0_2, %c0_3, %c39] : memref<1x4x440xf32, #tpu.memory_space<vmem>>, vector<1x4x362xf32>
    %3 = vector.shape_cast %2 : vector<1x4x362xf32> to vector<4x362xf32>
    %cst = arith.constant 0xFF800000 : f32
    %4 = vector.broadcast %cst : f32 to vector<1x320xf32>
    %cst_4 = arith.constant 0.000000e+00 : f32
    %5 = vector.broadcast %cst_4 : f32 to vector<1x320xf32>
    %cst_5 = arith.constant 0.000000e+00 : f32
    %6 = vector.broadcast %cst_5 : f32 to vector<4x320xf32>
    %c0_6 = arith.constant 0 : index
    %c0_7 = arith.constant 0 : index
    %c18 = arith.constant 18 : index
    %7 = vector.load %arg2[%c0_6, %c0_7, %c18] : memref<1x4x440xf32, #tpu.memory_space<vmem>>, vector<1x4x362xf32>
    %8 = vector.shape_cast %7 : vector<1x4x362xf32> to vector<4x362xf32>
    %9 = arith.mulf %3, %8 : vector<4x362xf32>
    %cst_8 = arith.constant dense<0.000000e+00> : vector<362xf32>
    %10 = vector.multi_reduction <add>, %9, %cst_8 [0] : vector<4x362xf32> to vector<362xf32>
    %11 = vector.shape_cast %10 : vector<362xf32> to vector<1x362xf32>
    %12 = vector.extract_strided_slice %11 {offsets = [0, 0], sizes = [1, 360], strides = [1, 1]} : vector<1x362xf32> to vector<1x360xf32>
    %13 = vector.extract_strided_slice %11 {offsets = [0, 1], sizes = [1, 360], strides = [1, 1]} : vector<1x362xf32> to vector<1x360xf32>
    %14 = arith.addf %12, %13 : vector<1x360xf32>
    %15 = vector.extract_strided_slice %11 {offsets = [0, 2], sizes = [1, 360], strides = [1, 1]} : vector<1x362xf32> to vector<1x360xf32>
    %16 = arith.addf %14, %15 : vector<1x360xf32>
    %17 = vector.extract_strided_slice %16 {offsets = [0, 0], sizes = [1, 320], strides = [1, 1]} : vector<1x360xf32> to vector<1x320xf32>
    %18 = vector.extract_strided_slice %16 {offsets = [0, 20], sizes = [1, 320], strides = [1, 1]} : vector<1x360xf32> to vector<1x320xf32>
    %19 = arith.addf %17, %18 : vector<1x320xf32>
    %20 = vector.extract_strided_slice %16 {offsets = [0, 40], sizes = [1, 320], strides = [1, 1]} : vector<1x360xf32> to vector<1x320xf32>
    %21 = arith.addf %19, %20 : vector<1x320xf32>
    %c1_i32 = arith.constant 1 : i32
    %22 = vector.broadcast %c1_i32 : i32 to vector<1x320xi32>
    %23 = arith.cmpi sge, %0, %22 : vector<1x320xi32>
    %c16_i32 = arith.constant 16 : i32
    %24 = vector.broadcast %c16_i32 : i32 to vector<1x320xi32>
    %25 = arith.cmpi sle, %0, %24 : vector<1x320xi32>
    %26 = arith.andi %23, %25 : vector<1x320xi1>
    %c1_i32_9 = arith.constant 1 : i32
    %27 = vector.broadcast %c1_i32_9 : i32 to vector<1x320xi32>
    %28 = arith.cmpi sge, %1, %27 : vector<1x320xi32>
    %29 = arith.andi %26, %28 : vector<1x320xi1>
    %c16_i32_10 = arith.constant 16 : i32
    %30 = vector.broadcast %c16_i32_10 : i32 to vector<1x320xi32>
    %31 = arith.cmpi sle, %1, %30 : vector<1x320xi32>
    %32 = arith.andi %29, %31 : vector<1x320xi1>
    %cst_11 = arith.constant 0.000000e+00 : f32
    %33 = vector.broadcast %cst_11 : f32 to vector<1x320xf32>
    %34 = arith.select %32, %21, %33 : vector<1x320xi1>, vector<1x320xf32>
    %35 = arith.maximumf %4, %34 : vector<1x320xf32>
    %36 = arith.subf %4, %35 : vector<1x320xf32>
    %37 = math.exp %36 : vector<1x320xf32>
    %38 = arith.subf %34, %35 : vector<1x320xf32>
    %39 = math.exp %38 : vector<1x320xf32>
    %40 = arith.mulf %5, %37 : vector<1x320xf32>
    %41 = arith.addf %40, %39 : vector<1x320xf32>
    %c0_12 = arith.constant 0 : index
    %c0_13 = arith.constant 0 : index
    %c39_14 = arith.constant 39 : index
    %42 = vector.load %arg3[%c0_12, %c0_13, %c39_14] : memref<1x4x440xf32, #tpu.memory_space<vmem>>, vector<1x4x320xf32>
    %43 = vector.shape_cast %42 : vector<1x4x320xf32> to vector<4x320xf32>
    %44 = vector.broadcast %37 : vector<1x320xf32> to vector<4x320xf32>
    %45 = arith.mulf %6, %44 : vector<4x320xf32>
    %46 = vector.broadcast %39 : vector<1x320xf32> to vector<4x320xf32>
    %47 = arith.mulf %46, %43 : vector<4x320xf32>
    %48 = arith.addf %45, %47 : vector<4x320xf32>
    %c0_15 = arith.constant 0 : index
    %c0_16 = arith.constant 0 : index
    %c19 = arith.constant 19 : index
    %49 = vector.load %arg2[%c0_15, %c0_16, %c19] : memref<1x4x440xf32, #tpu.memory_space<vmem>>, vector<1x4x362xf32>
    %50 = vector.shape_cast %49 : vector<1x4x362xf32> to vector<4x362xf32>
    %51 = arith.mulf %3, %50 : vector<4x362xf32>
    %cst_17 = arith.constant dense<0.000000e+00> : vector<362xf32>
    %52 = vector.multi_reduction <add>, %51, %cst_17 [0] : vector<4x362xf32> to vector<362xf32>
    %53 = vector.shape_cast %52 : vector<362xf32> to vector<1x362xf32>
    %54 = vector.extract_strided_slice %53 {offsets = [0, 0], sizes = [1, 360], strides = [1, 1]} : vector<1x362xf32> to vector<1x360xf32>
    %55 = vector.extract_strided_slice %53 {offsets = [0, 1], sizes = [1, 360], strides = [1, 1]} : vector<1x362xf32> to vector<1x360xf32>
    %56 = arith.addf %54, %55 : vector<1x360xf32>
    %57 = vector.extract_strided_slice %53 {offsets = [0, 2], sizes = [1, 360], strides = [1, 1]} : vector<1x362xf32> to vector<1x360xf32>
    %58 = arith.addf %56, %57 : vector<1x360xf32>
    %59 = vector.extract_strided_slice %58 {offsets = [0, 0], sizes = [1, 320], strides = [1, 1]} : vector<1x360xf32> to vector<1x320xf32>
    %60 = vector.extract_strided_slice %58 {offsets = [0, 20], sizes = [1, 320], strides = [1, 1]} : vector<1x360xf32> to vector<1x320xf32>
    %61 = arith.addf %59, %60 : vector<1x320xf32>
    %62 = vector.extract_strided_slice %58 {offsets = [0, 40], sizes = [1, 320], strides = [1, 1]} : vector<1x360xf32> to vector<1x320xf32>
    %63 = arith.addf %61, %62 : vector<1x320xf32>
    %c1_i32_18 = arith.constant 1 : i32
    %64 = vector.broadcast %c1_i32_18 : i32 to vector<1x320xi32>
    %65 = arith.cmpi sge, %0, %64 : vector<1x320xi32>
    %c16_i32_19 = arith.constant 16 : i32
    %66 = vector.broadcast %c16_i32_19 : i32 to vector<1x320xi32>
    %67 = arith.cmpi sle, %0, %66 : vector<1x320xi32>
    %68 = arith.andi %65, %67 : vector<1x320xi1>
    %c0_i32 = arith.constant 0 : i32
    %69 = vector.broadcast %c0_i32 : i32 to vector<1x320xi32>
    %70 = arith.cmpi sge, %1, %69 : vector<1x320xi32>
    %71 = arith.andi %68, %70 : vector<1x320xi1>
    %c15_i32 = arith.constant 15 : i32
    %72 = vector.broadcast %c15_i32 : i32 to vector<1x320xi32>
    %73 = arith.cmpi sle, %1, %72 : vector<1x320xi32>
    %74 = arith.andi %71, %73 : vector<1x320xi1>
    %cst_20 = arith.constant 0.000000e+00 : f32
    %75 = vector.broadcast %cst_20 : f32 to vector<1x320xf32>
    %76 = arith.select %74, %63, %75 : vector<1x320xi1>, vector<1x320xf32>
    %77 = arith.maximumf %35, %76 : vector<1x320xf32>
    %78 = arith.subf %35, %77 : vector<1x320xf32>
    %79 = math.exp %78 : vector<1x320xf32>
    %80 = arith.subf %76, %77 : vector<1x320xf32>
    %81 = math.exp %80 : vector<1x320xf32>
    %82 = arith.mulf %41, %79 : vector<1x320xf32>
    %83 = arith.addf %82, %81 : vector<1x320xf32>
    %c0_21 = arith.constant 0 : index
    %c0_22 = arith.constant 0 : index
    %c40 = arith.constant 40 : index
    %84 = vector.load %arg3[%c0_21, %c0_22, %c40] : memref<1x4x440xf32, #tpu.memory_space<vmem>>, vector<1x4x320xf32>
    %85 = vector.shape_cast %84 : vector<1x4x320xf32> to vector<4x320xf32>
    %86 = vector.broadcast %79 : vector<1x320xf32> to vector<4x320xf32>
    %87 = arith.mulf %48, %86 : vector<4x320xf32>
    %88 = vector.broadcast %81 : vector<1x320xf32> to vector<4x320xf32>
    %89 = arith.mulf %88, %85 : vector<4x320xf32>
    %90 = arith.addf %87, %89 : vector<4x320xf32>
    %c0_23 = arith.constant 0 : index
    %c0_24 = arith.constant 0 : index
    %c20 = arith.constant 20 : index
    %91 = vector.load %arg2[%c0_23, %c0_24, %c20] : memref<1x4x440xf32, #tpu.memory_space<vmem>>, vector<1x4x362xf32>
    %92 = vector.shape_cast %91 : vector<1x4x362xf32> to vector<4x362xf32>
    %93 = arith.mulf %3, %92 : vector<4x362xf32>
    %cst_25 = arith.constant dense<0.000000e+00> : vector<362xf32>
    %94 = vector.multi_reduction <add>, %93, %cst_25 [0] : vector<4x362xf32> to vector<362xf32>
    %95 = vector.shape_cast %94 : vector<362xf32> to vector<1x362xf32>
    %96 = vector.extract_strided_slice %95 {offsets = [0, 0], sizes = [1, 360], strides = [1, 1]} : vector<1x362xf32> to vector<1x360xf32>
    %97 = vector.extract_strided_slice %95 {offsets = [0, 1], sizes = [1, 360], strides = [1, 1]} : vector<1x362xf32> to vector<1x360xf32>
    %98 = arith.addf %96, %97 : vector<1x360xf32>
    %99 = vector.extract_strided_slice %95 {offsets = [0, 2], sizes = [1, 360], strides = [1, 1]} : vector<1x362xf32> to vector<1x360xf32>
    %100 = arith.addf %98, %99 : vector<1x360xf32>
    %101 = vector.extract_strided_slice %100 {offsets = [0, 0], sizes = [1, 320], strides = [1, 1]} : vector<1x360xf32> to vector<1x320xf32>
    %102 = vector.extract_strided_slice %100 {offsets = [0, 20], sizes = [1, 320], strides = [1, 1]} : vector<1x360xf32> to vector<1x320xf32>
    %103 = arith.addf %101, %102 : vector<1x320xf32>
    %104 = vector.extract_strided_slice %100 {offsets = [0, 40], sizes = [1, 320], strides = [1, 1]} : vector<1x360xf32> to vector<1x320xf32>
    %105 = arith.addf %103, %104 : vector<1x320xf32>
    %c1_i32_26 = arith.constant 1 : i32
    %106 = vector.broadcast %c1_i32_26 : i32 to vector<1x320xi32>
    %107 = arith.cmpi sge, %0, %106 : vector<1x320xi32>
    %c16_i32_27 = arith.constant 16 : i32
    %108 = vector.broadcast %c16_i32_27 : i32 to vector<1x320xi32>
    %109 = arith.cmpi sle, %0, %108 : vector<1x320xi32>
    %110 = arith.andi %107, %109 : vector<1x320xi1>
    %c-1_i32 = arith.constant -1 : i32
    %111 = vector.broadcast %c-1_i32 : i32 to vector<1x320xi32>
    %112 = arith.cmpi sge, %1, %111 : vector<1x320xi32>
    %113 = arith.andi %110, %112 : vector<1x320xi1>
    %c14_i32 = arith.constant 14 : i32
    %114 = vector.broadcast %c14_i32 : i32 to vector<1x320xi32>
    %115 = arith.cmpi sle, %1, %114 : vector<1x320xi32>
    %116 = arith.andi %113, %115 : vector<1x320xi1>
    %cst_28 = arith.constant 0.000000e+00 : f32
    %117 = vector.broadcast %cst_28 : f32 to vector<1x320xf32>
    %118 = arith.select %116, %105, %117 : vector<1x320xi1>, vector<1x320xf32>
    %119 = arith.maximumf %77, %118 : vector<1x320xf32>
    %120 = arith.subf %77, %119 : vector<1x320xf32>
    %121 = math.exp %120 : vector<1x320xf32>
    %122 = arith.subf %118, %119 : vector<1x320xf32>
    %123 = math.exp %122 : vector<1x320xf32>
    %124 = arith.mulf %83, %121 : vector<1x320xf32>
    %125 = arith.addf %124, %123 : vector<1x320xf32>
    %c0_29 = arith.constant 0 : index
    %c0_30 = arith.constant 0 : index
    %c41 = arith.constant 41 : index
    %126 = vector.load %arg3[%c0_29, %c0_30, %c41] : memref<1x4x440xf32, #tpu.memory_space<vmem>>, vector<1x4x320xf32>
    %127 = vector.shape_cast %126 : vector<1x4x320xf32> to vector<4x320xf32>
    %128 = vector.broadcast %121 : vector<1x320xf32> to vector<4x320xf32>
    %129 = arith.mulf %90, %128 : vector<4x320xf32>
    %130 = vector.broadcast %123 : vector<1x320xf32> to vector<4x320xf32>
    %131 = arith.mulf %130, %127 : vector<4x320xf32>
    %132 = arith.addf %129, %131 : vector<4x320xf32>
    %c0_31 = arith.constant 0 : index
    %c0_32 = arith.constant 0 : index
    %c38 = arith.constant 38 : index
    %133 = vector.load %arg2[%c0_31, %c0_32, %c38] : memref<1x4x440xf32, #tpu.memory_space<vmem>>, vector<1x4x362xf32>
    %134 = vector.shape_cast %133 : vector<1x4x362xf32> to vector<4x362xf32>
    %135 = arith.mulf %3, %134 : vector<4x362xf32>
    %cst_33 = arith.constant dense<0.000000e+00> : vector<362xf32>
    %136 = vector.multi_reduction <add>, %135, %cst_33 [0] : vector<4x362xf32> to vector<362xf32>
    %137 = vector.shape_cast %136 : vector<362xf32> to vector<1x362xf32>
    %138 = vector.extract_strided_slice %137 {offsets = [0, 0], sizes = [1, 360], strides = [1, 1]} : vector<1x362xf32> to vector<1x360xf32>
    %139 = vector.extract_strided_slice %137 {offsets = [0, 1], sizes = [1, 360], strides = [1, 1]} : vector<1x362xf32> to vector<1x360xf32>
    %140 = arith.addf %138, %139 : vector<1x360xf32>
    %141 = vector.extract_strided_slice %137 {offsets = [0, 2], sizes = [1, 360], strides = [1, 1]} : vector<1x362xf32> to vector<1x360xf32>
    %142 = arith.addf %140, %141 : vector<1x360xf32>
    %143 = vector.extract_strided_slice %142 {offsets = [0, 0], sizes = [1, 320], strides = [1, 1]} : vector<1x360xf32> to vector<1x320xf32>
    %144 = vector.extract_strided_slice %142 {offsets = [0, 20], sizes = [1, 320], strides = [1, 1]} : vector<1x360xf32> to vector<1x320xf32>
    %145 = arith.addf %143, %144 : vector<1x320xf32>
    %146 = vector.extract_strided_slice %142 {offsets = [0, 40], sizes = [1, 320], strides = [1, 1]} : vector<1x360xf32> to vector<1x320xf32>
    %147 = arith.addf %145, %146 : vector<1x320xf32>
    %c0_i32_34 = arith.constant 0 : i32
    %148 = vector.broadcast %c0_i32_34 : i32 to vector<1x320xi32>
    %149 = arith.cmpi sge, %0, %148 : vector<1x320xi32>
    %c15_i32_35 = arith.constant 15 : i32
    %150 = vector.broadcast %c15_i32_35 : i32 to vector<1x320xi32>
    %151 = arith.cmpi sle, %0, %150 : vector<1x320xi32>
    %152 = arith.andi %149, %151 : vector<1x320xi1>
    %c1_i32_36 = arith.constant 1 : i32
    %153 = vector.broadcast %c1_i32_36 : i32 to vector<1x320xi32>
    %154 = arith.cmpi sge, %1, %153 : vector<1x320xi32>
    %155 = arith.andi %152, %154 : vector<1x320xi1>
    %c16_i32_37 = arith.constant 16 : i32
    %156 = vector.broadcast %c16_i32_37 : i32 to vector<1x320xi32>
    %157 = arith.cmpi sle, %1, %156 : vector<1x320xi32>
    %158 = arith.andi %155, %157 : vector<1x320xi1>
    %cst_38 = arith.constant 0.000000e+00 : f32
    %159 = vector.broadcast %cst_38 : f32 to vector<1x320xf32>
    %160 = arith.select %158, %147, %159 : vector<1x320xi1>, vector<1x320xf32>
    %161 = arith.maximumf %119, %160 : vector<1x320xf32>
    %162 = arith.subf %119, %161 : vector<1x320xf32>
    %163 = math.exp %162 : vector<1x320xf32>
    %164 = arith.subf %160, %161 : vector<1x320xf32>
    %165 = math.exp %164 : vector<1x320xf32>
    %166 = arith.mulf %125, %163 : vector<1x320xf32>
    %167 = arith.addf %166, %165 : vector<1x320xf32>
    %c0_39 = arith.constant 0 : index
    %c0_40 = arith.constant 0 : index
    %c59 = arith.constant 59 : index
    %168 = vector.load %arg3[%c0_39, %c0_40, %c59] : memref<1x4x440xf32, #tpu.memory_space<vmem>>, vector<1x4x320xf32>
    %169 = vector.shape_cast %168 : vector<1x4x320xf32> to vector<4x320xf32>
    %170 = vector.broadcast %163 : vector<1x320xf32> to vector<4x320xf32>
    %171 = arith.mulf %132, %170 : vector<4x320xf32>
    %172 = vector.broadcast %165 : vector<1x320xf32> to vector<4x320xf32>
    %173 = arith.mulf %172, %169 : vector<4x320xf32>
    %174 = arith.addf %171, %173 : vector<4x320xf32>
    %c0_41 = arith.constant 0 : index
    %c0_42 = arith.constant 0 : index
    %c39_43 = arith.constant 39 : index
    %175 = vector.load %arg2[%c0_41, %c0_42, %c39_43] : memref<1x4x440xf32, #tpu.memory_space<vmem>>, vector<1x4x362xf32>
    %176 = vector.shape_cast %175 : vector<1x4x362xf32> to vector<4x362xf32>
    %177 = arith.mulf %3, %176 : vector<4x362xf32>
    %cst_44 = arith.constant dense<0.000000e+00> : vector<362xf32>
    %178 = vector.multi_reduction <add>, %177, %cst_44 [0] : vector<4x362xf32> to vector<362xf32>
    %179 = vector.shape_cast %178 : vector<362xf32> to vector<1x362xf32>
    %180 = vector.extract_strided_slice %179 {offsets = [0, 0], sizes = [1, 360], strides = [1, 1]} : vector<1x362xf32> to vector<1x360xf32>
    %181 = vector.extract_strided_slice %179 {offsets = [0, 1], sizes = [1, 360], strides = [1, 1]} : vector<1x362xf32> to vector<1x360xf32>
    %182 = arith.addf %180, %181 : vector<1x360xf32>
    %183 = vector.extract_strided_slice %179 {offsets = [0, 2], sizes = [1, 360], strides = [1, 1]} : vector<1x362xf32> to vector<1x360xf32>
    %184 = arith.addf %182, %183 : vector<1x360xf32>
    %185 = vector.extract_strided_slice %184 {offsets = [0, 0], sizes = [1, 320], strides = [1, 1]} : vector<1x360xf32> to vector<1x320xf32>
    %186 = vector.extract_strided_slice %184 {offsets = [0, 20], sizes = [1, 320], strides = [1, 1]} : vector<1x360xf32> to vector<1x320xf32>
    %187 = arith.addf %185, %186 : vector<1x320xf32>
    %188 = vector.extract_strided_slice %184 {offsets = [0, 40], sizes = [1, 320], strides = [1, 1]} : vector<1x360xf32> to vector<1x320xf32>
    %189 = arith.addf %187, %188 : vector<1x320xf32>
    %c0_i32_45 = arith.constant 0 : i32
    %190 = vector.broadcast %c0_i32_45 : i32 to vector<1x320xi32>
    %191 = arith.cmpi sge, %0, %190 : vector<1x320xi32>
    %c15_i32_46 = arith.constant 15 : i32
    %192 = vector.broadcast %c15_i32_46 : i32 to vector<1x320xi32>
    %193 = arith.cmpi sle, %0, %192 : vector<1x320xi32>
    %194 = arith.andi %191, %193 : vector<1x320xi1>
    %c0_i32_47 = arith.constant 0 : i32
    %195 = vector.broadcast %c0_i32_47 : i32 to vector<1x320xi32>
    %196 = arith.cmpi sge, %1, %195 : vector<1x320xi32>
    %197 = arith.andi %194, %196 : vector<1x320xi1>
    %c15_i32_48 = arith.constant 15 : i32
    %198 = vector.broadcast %c15_i32_48 : i32 to vector<1x320xi32>
    %199 = arith.cmpi sle, %1, %198 : vector<1x320xi32>
    %200 = arith.andi %197, %199 : vector<1x320xi1>
    %cst_49 = arith.constant 0.000000e+00 : f32
    %201 = vector.broadcast %cst_49 : f32 to vector<1x320xf32>
    %202 = arith.select %200, %189, %201 : vector<1x320xi1>, vector<1x320xf32>
    %203 = arith.maximumf %161, %202 : vector<1x320xf32>
    %204 = arith.subf %161, %203 : vector<1x320xf32>
    %205 = math.exp %204 : vector<1x320xf32>
    %206 = arith.subf %202, %203 : vector<1x320xf32>
    %207 = math.exp %206 : vector<1x320xf32>
    %208 = arith.mulf %167, %205 : vector<1x320xf32>
    %209 = arith.addf %208, %207 : vector<1x320xf32>
    %c0_50 = arith.constant 0 : index
    %c0_51 = arith.constant 0 : index
    %c60 = arith.constant 60 : index
    %210 = vector.load %arg3[%c0_50, %c0_51, %c60] : memref<1x4x440xf32, #tpu.memory_space<vmem>>, vector<1x4x320xf32>
    %211 = vector.shape_cast %210 : vector<1x4x320xf32> to vector<4x320xf32>
    %212 = vector.broadcast %205 : vector<1x320xf32> to vector<4x320xf32>
    %213 = arith.mulf %174, %212 : vector<4x320xf32>
    %214 = vector.broadcast %207 : vector<1x320xf32> to vector<4x320xf32>
    %215 = arith.mulf %214, %211 : vector<4x320xf32>
    %216 = arith.addf %213, %215 : vector<4x320xf32>
    %c0_52 = arith.constant 0 : index
    %c0_53 = arith.constant 0 : index
    %c40_54 = arith.constant 40 : index
    %217 = vector.load %arg2[%c0_52, %c0_53, %c40_54] : memref<1x4x440xf32, #tpu.memory_space<vmem>>, vector<1x4x362xf32>
    %218 = vector.shape_cast %217 : vector<1x4x362xf32> to vector<4x362xf32>
    %219 = arith.mulf %3, %218 : vector<4x362xf32>
    %cst_55 = arith.constant dense<0.000000e+00> : vector<362xf32>
    %220 = vector.multi_reduction <add>, %219, %cst_55 [0] : vector<4x362xf32> to vector<362xf32>
    %221 = vector.shape_cast %220 : vector<362xf32> to vector<1x362xf32>
    %222 = vector.extract_strided_slice %221 {offsets = [0, 0], sizes = [1, 360], strides = [1, 1]} : vector<1x362xf32> to vector<1x360xf32>
    %223 = vector.extract_strided_slice %221 {offsets = [0, 1], sizes = [1, 360], strides = [1, 1]} : vector<1x362xf32> to vector<1x360xf32>
    %224 = arith.addf %222, %223 : vector<1x360xf32>
    %225 = vector.extract_strided_slice %221 {offsets = [0, 2], sizes = [1, 360], strides = [1, 1]} : vector<1x362xf32> to vector<1x360xf32>
    %226 = arith.addf %224, %225 : vector<1x360xf32>
    %227 = vector.extract_strided_slice %226 {offsets = [0, 0], sizes = [1, 320], strides = [1, 1]} : vector<1x360xf32> to vector<1x320xf32>
    %228 = vector.extract_strided_slice %226 {offsets = [0, 20], sizes = [1, 320], strides = [1, 1]} : vector<1x360xf32> to vector<1x320xf32>
    %229 = arith.addf %227, %228 : vector<1x320xf32>
    %230 = vector.extract_strided_slice %226 {offsets = [0, 40], sizes = [1, 320], strides = [1, 1]} : vector<1x360xf32> to vector<1x320xf32>
    %231 = arith.addf %229, %230 : vector<1x320xf32>
    %c0_i32_56 = arith.constant 0 : i32
    %232 = vector.broadcast %c0_i32_56 : i32 to vector<1x320xi32>
    %233 = arith.cmpi sge, %0, %232 : vector<1x320xi32>
    %c15_i32_57 = arith.constant 15 : i32
    %234 = vector.broadcast %c15_i32_57 : i32 to vector<1x320xi32>
    %235 = arith.cmpi sle, %0, %234 : vector<1x320xi32>
    %236 = arith.andi %233, %235 : vector<1x320xi1>
    %c-1_i32_58 = arith.constant -1 : i32
    %237 = vector.broadcast %c-1_i32_58 : i32 to vector<1x320xi32>
    %238 = arith.cmpi sge, %1, %237 : vector<1x320xi32>
    %239 = arith.andi %236, %238 : vector<1x320xi1>
    %c14_i32_59 = arith.constant 14 : i32
    %240 = vector.broadcast %c14_i32_59 : i32 to vector<1x320xi32>
    %241 = arith.cmpi sle, %1, %240 : vector<1x320xi32>
    %242 = arith.andi %239, %241 : vector<1x320xi1>
    %cst_60 = arith.constant 0.000000e+00 : f32
    %243 = vector.broadcast %cst_60 : f32 to vector<1x320xf32>
    %244 = arith.select %242, %231, %243 : vector<1x320xi1>, vector<1x320xf32>
    %245 = arith.maximumf %203, %244 : vector<1x320xf32>
    %246 = arith.subf %203, %245 : vector<1x320xf32>
    %247 = math.exp %246 : vector<1x320xf32>
    %248 = arith.subf %244, %245 : vector<1x320xf32>
    %249 = math.exp %248 : vector<1x320xf32>
    %250 = arith.mulf %209, %247 : vector<1x320xf32>
    %251 = arith.addf %250, %249 : vector<1x320xf32>
    %c0_61 = arith.constant 0 : index
    %c0_62 = arith.constant 0 : index
    %c61 = arith.constant 61 : index
    %252 = vector.load %arg3[%c0_61, %c0_62, %c61] : memref<1x4x440xf32, #tpu.memory_space<vmem>>, vector<1x4x320xf32>
    %253 = vector.shape_cast %252 : vector<1x4x320xf32> to vector<4x320xf32>
    %254 = vector.broadcast %247 : vector<1x320xf32> to vector<4x320xf32>
    %255 = arith.mulf %216, %254 : vector<4x320xf32>
    %256 = vector.broadcast %249 : vector<1x320xf32> to vector<4x320xf32>
    %257 = arith.mulf %256, %253 : vector<4x320xf32>
    %258 = arith.addf %255, %257 : vector<4x320xf32>
    %c0_63 = arith.constant 0 : index
    %c0_64 = arith.constant 0 : index
    %c58 = arith.constant 58 : index
    %259 = vector.load %arg2[%c0_63, %c0_64, %c58] : memref<1x4x440xf32, #tpu.memory_space<vmem>>, vector<1x4x362xf32>
    %260 = vector.shape_cast %259 : vector<1x4x362xf32> to vector<4x362xf32>
    %261 = arith.mulf %3, %260 : vector<4x362xf32>
    %cst_65 = arith.constant dense<0.000000e+00> : vector<362xf32>
    %262 = vector.multi_reduction <add>, %261, %cst_65 [0] : vector<4x362xf32> to vector<362xf32>
    %263 = vector.shape_cast %262 : vector<362xf32> to vector<1x362xf32>
    %264 = vector.extract_strided_slice %263 {offsets = [0, 0], sizes = [1, 360], strides = [1, 1]} : vector<1x362xf32> to vector<1x360xf32>
    %265 = vector.extract_strided_slice %263 {offsets = [0, 1], sizes = [1, 360], strides = [1, 1]} : vector<1x362xf32> to vector<1x360xf32>
    %266 = arith.addf %264, %265 : vector<1x360xf32>
    %267 = vector.extract_strided_slice %263 {offsets = [0, 2], sizes = [1, 360], strides = [1, 1]} : vector<1x362xf32> to vector<1x360xf32>
    %268 = arith.addf %266, %267 : vector<1x360xf32>
    %269 = vector.extract_strided_slice %268 {offsets = [0, 0], sizes = [1, 320], strides = [1, 1]} : vector<1x360xf32> to vector<1x320xf32>
    %270 = vector.extract_strided_slice %268 {offsets = [0, 20], sizes = [1, 320], strides = [1, 1]} : vector<1x360xf32> to vector<1x320xf32>
    %271 = arith.addf %269, %270 : vector<1x320xf32>
    %272 = vector.extract_strided_slice %268 {offsets = [0, 40], sizes = [1, 320], strides = [1, 1]} : vector<1x360xf32> to vector<1x320xf32>
    %273 = arith.addf %271, %272 : vector<1x320xf32>
    %c-1_i32_66 = arith.constant -1 : i32
    %274 = vector.broadcast %c-1_i32_66 : i32 to vector<1x320xi32>
    %275 = arith.cmpi sge, %0, %274 : vector<1x320xi32>
    %c14_i32_67 = arith.constant 14 : i32
    %276 = vector.broadcast %c14_i32_67 : i32 to vector<1x320xi32>
    %277 = arith.cmpi sle, %0, %276 : vector<1x320xi32>
    %278 = arith.andi %275, %277 : vector<1x320xi1>
    %c1_i32_68 = arith.constant 1 : i32
    %279 = vector.broadcast %c1_i32_68 : i32 to vector<1x320xi32>
    %280 = arith.cmpi sge, %1, %279 : vector<1x320xi32>
    %281 = arith.andi %278, %280 : vector<1x320xi1>
    %c16_i32_69 = arith.constant 16 : i32
    %282 = vector.broadcast %c16_i32_69 : i32 to vector<1x320xi32>
    %283 = arith.cmpi sle, %1, %282 : vector<1x320xi32>
    %284 = arith.andi %281, %283 : vector<1x320xi1>
    %cst_70 = arith.constant 0.000000e+00 : f32
    %285 = vector.broadcast %cst_70 : f32 to vector<1x320xf32>
    %286 = arith.select %284, %273, %285 : vector<1x320xi1>, vector<1x320xf32>
    %287 = arith.maximumf %245, %286 : vector<1x320xf32>
    %288 = arith.subf %245, %287 : vector<1x320xf32>
    %289 = math.exp %288 : vector<1x320xf32>
    %290 = arith.subf %286, %287 : vector<1x320xf32>
    %291 = math.exp %290 : vector<1x320xf32>
    %292 = arith.mulf %251, %289 : vector<1x320xf32>
    %293 = arith.addf %292, %291 : vector<1x320xf32>
    %c0_71 = arith.constant 0 : index
    %c0_72 = arith.constant 0 : index
    %c79 = arith.constant 79 : index
    %294 = vector.load %arg3[%c0_71, %c0_72, %c79] : memref<1x4x440xf32, #tpu.memory_space<vmem>>, vector<1x4x320xf32>
    %295 = vector.shape_cast %294 : vector<1x4x320xf32> to vector<4x320xf32>
    %296 = vector.broadcast %289 : vector<1x320xf32> to vector<4x320xf32>
    %297 = arith.mulf %258, %296 : vector<4x320xf32>
    %298 = vector.broadcast %291 : vector<1x320xf32> to vector<4x320xf32>
    %299 = arith.mulf %298, %295 : vector<4x320xf32>
    %300 = arith.addf %297, %299 : vector<4x320xf32>
    %c0_73 = arith.constant 0 : index
    %c0_74 = arith.constant 0 : index
    %c59_75 = arith.constant 59 : index
    %301 = vector.load %arg2[%c0_73, %c0_74, %c59_75] : memref<1x4x440xf32, #tpu.memory_space<vmem>>, vector<1x4x362xf32>
    %302 = vector.shape_cast %301 : vector<1x4x362xf32> to vector<4x362xf32>
    %303 = arith.mulf %3, %302 : vector<4x362xf32>
    %cst_76 = arith.constant dense<0.000000e+00> : vector<362xf32>
    %304 = vector.multi_reduction <add>, %303, %cst_76 [0] : vector<4x362xf32> to vector<362xf32>
    %305 = vector.shape_cast %304 : vector<362xf32> to vector<1x362xf32>
    %306 = vector.extract_strided_slice %305 {offsets = [0, 0], sizes = [1, 360], strides = [1, 1]} : vector<1x362xf32> to vector<1x360xf32>
    %307 = vector.extract_strided_slice %305 {offsets = [0, 1], sizes = [1, 360], strides = [1, 1]} : vector<1x362xf32> to vector<1x360xf32>
    %308 = arith.addf %306, %307 : vector<1x360xf32>
    %309 = vector.extract_strided_slice %305 {offsets = [0, 2], sizes = [1, 360], strides = [1, 1]} : vector<1x362xf32> to vector<1x360xf32>
    %310 = arith.addf %308, %309 : vector<1x360xf32>
    %311 = vector.extract_strided_slice %310 {offsets = [0, 0], sizes = [1, 320], strides = [1, 1]} : vector<1x360xf32> to vector<1x320xf32>
    %312 = vector.extract_strided_slice %310 {offsets = [0, 20], sizes = [1, 320], strides = [1, 1]} : vector<1x360xf32> to vector<1x320xf32>
    %313 = arith.addf %311, %312 : vector<1x320xf32>
    %314 = vector.extract_strided_slice %310 {offsets = [0, 40], sizes = [1, 320], strides = [1, 1]} : vector<1x360xf32> to vector<1x320xf32>
    %315 = arith.addf %313, %314 : vector<1x320xf32>
    %c-1_i32_77 = arith.constant -1 : i32
    %316 = vector.broadcast %c-1_i32_77 : i32 to vector<1x320xi32>
    %317 = arith.cmpi sge, %0, %316 : vector<1x320xi32>
    %c14_i32_78 = arith.constant 14 : i32
    %318 = vector.broadcast %c14_i32_78 : i32 to vector<1x320xi32>
    %319 = arith.cmpi sle, %0, %318 : vector<1x320xi32>
    %320 = arith.andi %317, %319 : vector<1x320xi1>
    %c0_i32_79 = arith.constant 0 : i32
    %321 = vector.broadcast %c0_i32_79 : i32 to vector<1x320xi32>
    %322 = arith.cmpi sge, %1, %321 : vector<1x320xi32>
    %323 = arith.andi %320, %322 : vector<1x320xi1>
    %c15_i32_80 = arith.constant 15 : i32
    %324 = vector.broadcast %c15_i32_80 : i32 to vector<1x320xi32>
    %325 = arith.cmpi sle, %1, %324 : vector<1x320xi32>
    %326 = arith.andi %323, %325 : vector<1x320xi1>
    %cst_81 = arith.constant 0.000000e+00 : f32
    %327 = vector.broadcast %cst_81 : f32 to vector<1x320xf32>
    %328 = arith.select %326, %315, %327 : vector<1x320xi1>, vector<1x320xf32>
    %329 = arith.maximumf %287, %328 : vector<1x320xf32>
    %330 = arith.subf %287, %329 : vector<1x320xf32>
    %331 = math.exp %330 : vector<1x320xf32>
    %332 = arith.subf %328, %329 : vector<1x320xf32>
    %333 = math.exp %332 : vector<1x320xf32>
    %334 = arith.mulf %293, %331 : vector<1x320xf32>
    %335 = arith.addf %334, %333 : vector<1x320xf32>
    %c0_82 = arith.constant 0 : index
    %c0_83 = arith.constant 0 : index
    %c80 = arith.constant 80 : index
    %336 = vector.load %arg3[%c0_82, %c0_83, %c80] : memref<1x4x440xf32, #tpu.memory_space<vmem>>, vector<1x4x320xf32>
    %337 = vector.shape_cast %336 : vector<1x4x320xf32> to vector<4x320xf32>
    %338 = vector.broadcast %331 : vector<1x320xf32> to vector<4x320xf32>
    %339 = arith.mulf %300, %338 : vector<4x320xf32>
    %340 = vector.broadcast %333 : vector<1x320xf32> to vector<4x320xf32>
    %341 = arith.mulf %340, %337 : vector<4x320xf32>
    %342 = arith.addf %339, %341 : vector<4x320xf32>
    %c0_84 = arith.constant 0 : index
    %c0_85 = arith.constant 0 : index
    %c60_86 = arith.constant 60 : index
    %343 = vector.load %arg2[%c0_84, %c0_85, %c60_86] : memref<1x4x440xf32, #tpu.memory_space<vmem>>, vector<1x4x362xf32>
    %344 = vector.shape_cast %343 : vector<1x4x362xf32> to vector<4x362xf32>
    %345 = arith.mulf %3, %344 : vector<4x362xf32>
    %cst_87 = arith.constant dense<0.000000e+00> : vector<362xf32>
    %346 = vector.multi_reduction <add>, %345, %cst_87 [0] : vector<4x362xf32> to vector<362xf32>
    %347 = vector.shape_cast %346 : vector<362xf32> to vector<1x362xf32>
    %348 = vector.extract_strided_slice %347 {offsets = [0, 0], sizes = [1, 360], strides = [1, 1]} : vector<1x362xf32> to vector<1x360xf32>
    %349 = vector.extract_strided_slice %347 {offsets = [0, 1], sizes = [1, 360], strides = [1, 1]} : vector<1x362xf32> to vector<1x360xf32>
    %350 = arith.addf %348, %349 : vector<1x360xf32>
    %351 = vector.extract_strided_slice %347 {offsets = [0, 2], sizes = [1, 360], strides = [1, 1]} : vector<1x362xf32> to vector<1x360xf32>
    %352 = arith.addf %350, %351 : vector<1x360xf32>
    %353 = vector.extract_strided_slice %352 {offsets = [0, 0], sizes = [1, 320], strides = [1, 1]} : vector<1x360xf32> to vector<1x320xf32>
    %354 = vector.extract_strided_slice %352 {offsets = [0, 20], sizes = [1, 320], strides = [1, 1]} : vector<1x360xf32> to vector<1x320xf32>
    %355 = arith.addf %353, %354 : vector<1x320xf32>
    %356 = vector.extract_strided_slice %352 {offsets = [0, 40], sizes = [1, 320], strides = [1, 1]} : vector<1x360xf32> to vector<1x320xf32>
    %357 = arith.addf %355, %356 : vector<1x320xf32>
    %c-1_i32_88 = arith.constant -1 : i32
    %358 = vector.broadcast %c-1_i32_88 : i32 to vector<1x320xi32>
    %359 = arith.cmpi sge, %0, %358 : vector<1x320xi32>
    %c14_i32_89 = arith.constant 14 : i32
    %360 = vector.broadcast %c14_i32_89 : i32 to vector<1x320xi32>
    %361 = arith.cmpi sle, %0, %360 : vector<1x320xi32>
    %362 = arith.andi %359, %361 : vector<1x320xi1>
    %c-1_i32_90 = arith.constant -1 : i32
    %363 = vector.broadcast %c-1_i32_90 : i32 to vector<1x320xi32>
    %364 = arith.cmpi sge, %1, %363 : vector<1x320xi32>
    %365 = arith.andi %362, %364 : vector<1x320xi1>
    %c14_i32_91 = arith.constant 14 : i32
    %366 = vector.broadcast %c14_i32_91 : i32 to vector<1x320xi32>
    %367 = arith.cmpi sle, %1, %366 : vector<1x320xi32>
    %368 = arith.andi %365, %367 : vector<1x320xi1>
    %cst_92 = arith.constant 0.000000e+00 : f32
    %369 = vector.broadcast %cst_92 : f32 to vector<1x320xf32>
    %370 = arith.select %368, %357, %369 : vector<1x320xi1>, vector<1x320xf32>
    %371 = arith.maximumf %329, %370 : vector<1x320xf32>
    %372 = arith.subf %329, %371 : vector<1x320xf32>
    %373 = math.exp %372 : vector<1x320xf32>
    %374 = arith.subf %370, %371 : vector<1x320xf32>
    %375 = math.exp %374 : vector<1x320xf32>
    %376 = arith.mulf %335, %373 : vector<1x320xf32>
    %377 = arith.addf %376, %375 : vector<1x320xf32>
    %c0_93 = arith.constant 0 : index
    %c0_94 = arith.constant 0 : index
    %c81 = arith.constant 81 : index
    %378 = vector.load %arg3[%c0_93, %c0_94, %c81] : memref<1x4x440xf32, #tpu.memory_space<vmem>>, vector<1x4x320xf32>
    %379 = vector.shape_cast %378 : vector<1x4x320xf32> to vector<4x320xf32>
    %380 = vector.broadcast %373 : vector<1x320xf32> to vector<4x320xf32>
    %381 = arith.mulf %342, %380 : vector<4x320xf32>
    %382 = vector.broadcast %375 : vector<1x320xf32> to vector<4x320xf32>
    %383 = arith.mulf %382, %379 : vector<4x320xf32>
    %384 = arith.addf %381, %383 : vector<4x320xf32>
    %cst_95 = arith.constant 1.000000e+00 : f32
    %385 = vector.broadcast %cst_95 : f32 to vector<1x320xf32>
    %386 = arith.divf %385, %377 : vector<1x320xf32>
    %387 = vector.broadcast %386 : vector<1x320xf32> to vector<4x320xf32>
    %388 = arith.mulf %384, %387 : vector<4x320xf32>
    %c0_96 = arith.constant 0 : index
    %c0_97 = arith.constant 0 : index
    %c0_98 = arith.constant 0 : index
    %389 = vector.load %arg4[%c0_96, %c0_97, %c0_98] : memref<1x4x320xf32, #tpu.memory_space<vmem>>, vector<1x4x320xf32>
    %390 = vector.shape_cast %389 : vector<1x4x320xf32> to vector<4x320xf32>
    %391 = vector.shape_cast %388 : vector<4x320xf32> to vector<1x4x320xf32>
    tpu.vector_store %arg4[%c0_96, %c0_97, %c0_98], %391 {strides = array<i32>} : memref<1x4x320xf32, #tpu.memory_space<vmem>>, vector<1x4x320xf32>,
    return
  }
  func.func @transform_0(%arg0: i32) -> (i32, i32) {
    %c0_i32 = arith.constant 0 : i32
    %c0_i32_0 = arith.constant 0 : i32
    %c0_i32_1 = arith.constant 0 : i32
    return %c0_i32, %c0_i32_0 : i32, i32
  }
  func.func @transform_1(%arg0: i32) -> (i32, i32, i32) {
    %c0_i32 = arith.constant 0 : i32
    %c0_i32_0 = arith.constant 0 : i32
    %c0_i32_1 = arith.constant 0 : i32
    return %arg0, %c0_i32, %c0_i32_0 : i32, i32, i32
  }
  func.func @transform_2(%arg0: i32) -> (i32, i32, i32) {
    %c0_i32 = arith.constant 0 : i32
    %c0_i32_0 = arith.constant 0 : i32
    %c0_i32_1 = arith.constant 0 : i32
    return %arg0, %c0_i32, %c0_i32_0 : i32, i32, i32
  }
  func.func @transform_3(%arg0: i32) -> (i32, i32, i32) {
    %c0_i32 = arith.constant 0 : i32
    %c0_i32_0 = arith.constant 0 : i32
    %c0_i32_1 = arith.constant 0 : i32
    return %arg0, %c0_i32, %c0_i32_0 : i32, i32, i32
  }
}

</mosaic_0001>

<bundles_post_ra>
// kernel: tile.8
= control target key start
LH: loop header
LB: loop body
LE: loop exit
PB: predicated region body
PF: predicated region fallthrough
CT: control target
= control target key end

     0   :  { %s28_s0 = inlined_call_operand.vmem [shape: s32[20], index: 0, kind: input, shape index: {}]   ;;  %s29_s1 = inlined_call_operand.vmem [shape: s32[16,20], index: 1, kind: output, shape index: {}]  }
   0x1   :  { %v4_v0 = vld [vmem:[%s28_s0] ss:$0 sm:$0xff] }
   0x2   :  { %5 = vst [vmem:[%s29_s1] sm:$0xff] %v4_v0  ;;  %8 = vst [vmem:[%s29_s1 + $0x8] sm:$0xff] %v4_v0 }

// kernel: tile.9
= control target key start
LH: loop header
LB: loop body
LE: loop exit
PB: predicated region body
PF: predicated region fallthrough
CT: control target
= control target key end

     0   :  { %vm9_vm0 = vcmask 64512   ;;  %vm22_vm1 = vcmask 130048   ;;  %s174_s14 = smov 120   ;;  %s175_s15 = smov 100   ;;  %vm3_vm2 = vcmask 162816   ;;  %vm13_vm3 = vcmask 97280   ;;  %s262_s0 = inlined_call_operand.vmem [shape: s32[16,20], index: 0, kind: input, shape index: {}]   ;;  %s263_s1 = inlined_call_operand.vmem [shape: s32[1,320], index: 1, kind: output, shape index: {}]  }
   0x1   :  { %v140_v0 = vld [vmem:[%s262_s0 + $0x6] sm:$0x1]   ;;  %v144_v3 = vld [vmem:[%s262_s0 + $0x5] sm:$0x1]   ;;  %v142_v4 = vld [vmem:[%s262_s0 + $0xc] sm:$0x1]  }
   0x2   :  { %v141_v1 = vld [vmem:[%s262_s0 + $0x6] sm:$0x1]   ;;  %34 = vrot.lane.b32.xlu1 %v144_v3, %s175_s15  ;;  %v143_v5 = vld [vmem:[%s262_s0 + $0xc] sm:$0x1]   ;;  %v145_v7 = vld [vmem:[%s262_s0 + $0xb] sm:$0x1]  }
   0x3   :  { %v10_v2 = vsel %vm9_vm0, %v141_v1, %v140_v0  ;;  %v23_v6 = vsel %vm22_vm1, %v143_v5, %v142_v4  ;;  %s176_s20 = smov 112   ;;  %s177_s21 = smov 92   ;;  %v146_v8 = vld [vmem:[%s262_s0 + $0x4] sm:$0x1]   ;;  %v147_v9 = vld [vmem:[%s262_s0 + $0xa] sm:$0x1]  }
   0x4   :  { %11 = vrot.lane.b32.xlu0 %v10_v2, %s174_s14  ;;  %v2_v10 = vld [vmem:[%s262_s0] sm:$0x1]   ;;  %s178_s28 = smov 80   ;;  %s179_s29 = smov 72   ;;  %v148_v11 = vld [vmem:[%s262_s0 + $0x3] sm:$0x1]  }
   0x5   :  { %4 = vst.msk [vmem:[#allocation0] sm:$0x1] %vm3_vm2, %v2_v10   ;;  %v149_v12 = vld [vmem:[%s262_s0 + $0x9] sm:$0x1]   ;;  %s180_s5 = smov 60   ;;  %s181_s6 = smov 52  }
   0x6   :  { %40 = vrot.lane.b32.xlu1 %v145_v7, %s177_s21  ;;  %v150_v13 = vld [vmem:[%s262_s0 + $0xf] sm:$0x1]   ;;  %v151_v14 = vld [vmem:[%s262_s0 + $0x2] sm:$0x1]   ;;  %s182_s11 = smov 44   ;;  %s183_s12 = smov 40  }
   0x7   :  { %v152_v15 = vld [vmem:[%s262_s0 + $0x8] sm:$0x1]   ;;  %v153_v16 = vld [vmem:[%s262_s0 + $0xe] sm:$0x1]   ;;  %s184_s17 = smov 32   ;;  %s185_s18 = smov 24  }
   0x8   :  { %24 = vrot.lane.b32.xlu0 %v23_v6, %s176_s20  ;;  %v154_v17 = vld [vmem:[%s262_s0 + $0x1] sm:$0x1]   ;;  %v155_v18 = vld [vmem:[%s262_s0 + $0x7] sm:$0x1]   ;;  %s186_s23 = smov 20   ;;  %s187_s24 = smov 12  }
   0x9   :  { %v156_v19 = vld [vmem:[%s262_s0 + $0xd] sm:$0x1]   ;;  %s188_s0 = smov 4   ;;  %vm16_vm4 = vcmask 1048512   ;;  %vm36_vm5 = vcmask 982816   ;;  %vm26_vm6 = vcmask 31744  }
   0xa   :  { %53 = vrot.lane.b32.xlu1 %v147_v9, %s179_s29  ;;  %vm29_vm7 = vcmask 1048448   ;;  %vm42_vm8 = vcmask 917216   ;;  %vm49_vm9 = vcmask 818816   ;;  %vm55_vm10 = vcmask 753216  }
   0xb   :  { %vm62_vm11 = vcmask 654816   ;;  %vm68_vm12 = vcmask 589216   ;;  %vm75_vm13 = vcmask 523616   ;;  %vm82_vm14 = vcmask 490816  }
   0xc   :  { %47 = vrot.lane.b32.xlu0 %v146_v8, %s178_s28  ;;  %vm88_vm15 = vcmask 425216   ;;  %vm95_vm0 = vcmask 359616   ;;  %vm102_vm1 = vcmask 326816   ;;  %vm108_vm2 = vcmask 261216  }
   0xe   :  { %66 = vrot.lane.b32.xlu1 %v149_v12, %s181_s6 }
  0x10   :  { %60 = vrot.lane.b32.xlu0 %v148_v11, %s180_s5 }
  0x12   :  { %80 = vrot.lane.b32.xlu1 %v151_v14, %s183_s12 }
  0x14   :  { %73 = vrot.lane.b32.xlu0 %v150_v13, %s182_s11 }
  0x16   :  { %93 = vrot.lane.b32.xlu1 %v153_v16, %s185_s18 }
  0x18   :  { %86 = vrot.lane.b32.xlu0 %v152_v15, %s184_s17 }
  0x1a   :  { %106 = vrot.lane.b32.xlu1 %v155_v18, %s187_s24 }
  0x1c   :  { %100 = vrot.lane.b32.xlu0 %v154_v17, %s186_s23 }
  0x20   :  { %113 = vrot.lane.b32.xlu0 %v156_v19, %s188_s0 }
  0x74   :  { %v35_v21 = vpop.permute.xlu1 %34  }
  0x76   :  { %v12_v20 = vpop.permute.xlu0 %11  }
  0x77   :  { %15 = vst.msk [vmem:[#allocation0 + $0x8] sm:$0x1] %vm13_vm3, %v12_v20   ;;  %vm115_vm3 = vcmask 195616  }
  0x78   :  { %17 = vst.msk [vmem:[#allocation0] sm:$0x1] %vm16_vm4, %v12_v20   ;;  %v41_v23 = vpop.permute.xlu1 %40  }
  0x79   :  { %37 = vst.msk [vmem:[#allocation0] sm:$0x1] %vm36_vm5, %v35_v21  }
  0x7a   :  { %v25_v22 = vpop.permute.xlu0 %24  }
  0x7b   :  { %28 = vst.msk [vmem:[#allocation0 + $0x10] sm:$0x1] %vm26_vm6, %v25_v22  }
  0x7c   :  { %31 = vst.msk [vmem:[#allocation0 + $0x8] sm:$0x1] %vm29_vm7, %v25_v22   ;;  %v54_v25 = vpop.permute.xlu1 %53  }
  0x7d   :  { %44 = vst.msk [vmem:[#allocation0 + $0x8] sm:$0x1] %vm42_vm8, %v41_v23  }
  0x7e   :  { %v48_v24 = vpop.permute.xlu0 %47   ;;  %57 = vst.msk [vmem:[#allocation0 + $0x8] sm:$0x1] %vm55_vm10, %v54_v25  }
  0x7f   :  { %50 = vst.msk [vmem:[#allocation0] sm:$0x1] %vm49_vm9, %v48_v24  }
  0x80   :  { %v67_v27 = vpop.permute.xlu1 %66  }
  0x81   :  { %70 = vst.msk [vmem:[#allocation0 + $0x8] sm:$0x1] %vm68_vm12, %v67_v27  }
  0x82   :  { %v61_v26 = vpop.permute.xlu0 %60  }
  0x83   :  { %63 = vst.msk [vmem:[#allocation0] sm:$0x1] %vm62_vm11, %v61_v26  }
  0x84   :  { %v81_v29 = vpop.permute.xlu1 %80  }
  0x85   :  { %83 = vst.msk [vmem:[#allocation0] sm:$0x1] %vm82_vm14, %v81_v29  }
  0x86   :  { %v74_v28 = vpop.permute.xlu0 %73  }
  0x87   :  { %77 = vst.msk [vmem:[#allocation0 + $0x10] sm:$0x1] %vm75_vm13, %v74_v28  }
  0x88   :  { %v94_v31 = vpop.permute.xlu1 %93  }
  0x89   :  { %97 = vst.msk [vmem:[#allocation0 + $0x10] sm:$0x1] %vm95_vm0, %v94_v31  }
  0x8a   :  { %v87_v30 = vpop.permute.xlu0 %86  }
  0x8b   :  { %90 = vst.msk [vmem:[#allocation0 + $0x8] sm:$0x1] %vm88_vm15, %v87_v30  }
  0x8c   :  { %v107_v33 = vpop.permute.xlu1 %106  }
  0x8d   :  { %110 = vst.msk [vmem:[#allocation0 + $0x8] sm:$0x1] %vm108_vm2, %v107_v33  }
  0x8e   :  { %v101_v32 = vpop.permute.xlu0 %100  }
  0x8f   :  { %103 = vst.msk [vmem:[#allocation0] sm:$0x1] %vm102_vm1, %v101_v32  }
  0x92   :  { %v114_v34 = vpop.permute.xlu0 %113  }
  0x93   :  { %117 = vst.msk [vmem:[#allocation0 + $0x10] sm:$0x1] %vm115_vm3, %v114_v34  }
  0x94   :  { %v127_v36 = vld [vmem:[#allocation0 + $0x8] sm:$0x1] }
  0x95   :  { %157 = vst [vmem:[%s263_s1 + $0x1] sm:$0x1] %v127_v36 }
  0x96   :  { %v122_v35 = vld [vmem:[#allocation0] sm:$0x1] }
  0x97   :  { %125 = vst [vmem:[%s263_s1] sm:$0x1] %v122_v35 }
  0x9a   :  { %v133_v37 = vld [vmem:[#allocation0 + $0x10] sm:$0x1] }
  0x9b   :  { %158 = vst [vmem:[%s263_s1 + $0x2] sm:$0x1] %v133_v37 }

// kernel: self_attention_es_dot_forward.1
= control target key start
LH: loop header
LB: loop body
LE: loop exit
PB: predicated region body
PF: predicated region fallthrough
CT: control target
= control target key end

     0   :  { %s2439_s12 = smov 0   ;;  %s3806_s0 = inlined_call_operand.vmem [shape: s32[2,320], index: 0, kind: input, shape index: {}]   ;;  %s3807_s1 = inlined_call_operand.vmem [shape: f32[2,4,440], index: 1, kind: input, shape index: {}]   ;;  %s3808_s2 = inlined_call_operand.vmem [shape: f32[2,4,440], index: 2, kind: input, shape index: {}]   ;;  %s3809_s3 = inlined_call_operand.vmem [shape: f32[2,4,320], index: 3, kind: output, shape index: {}]  }
   0x1 LB: > { %s2307_s13 = sadd.s32 4294967295, %s2398_s12   ;;  %p2311_p0 = scmp.ge.s32.totalorder %s2398_s12, 1  ;;  %s2398_s12 = sphi %s2439_s12, %s13_s12  }
   0x2   : > { %p147_p1 = scmp.lt.s32.totalorder %s2398_s12, 3 }
   0x4   : > { %p148_p2 = pnand %p2311_p0, %p147_p1 }
   0x6   : > { %151 = sbr.rel (%p148_p2) target bundleno = 803 (0x323), region = 32 }
   0xb   : > { %p176_p3 = scmp.lt.s32.totalorder %s2307_s13, 1  ;;  %s2400_s18 = smov 20   ;;  %vm207_vm0 = vcmask 1043456   ;;  %vm242_vm1 = vcmask 134144   ;;  %vm220_vm2 = vcmask 1043768   ;;  %vm442_vm3 = vcmask 162816  }
   0xc   : > { %s2401_s19 = smov 21   ;;  %s2402_s20 = smov 19   ;;  %vm205_vm4 = vcmask 171008   ;;  %vm664_vm5 = vcmask 154624   ;;  %vm888_vm6 = vcmask 7168   ;;  %vm262_vm7 = vcmask 1039360  }
   0xd   : > { %s3875_s13 = smov (!%p176_p3, %s2307_s13), 1  ;;  %s2403_s21 = smov 1   ;;  %vm1542_vm8 = vcmask 891904   ;;  %vm303_vm9 = vcmask 883712   ;;  %vm1995_vm10 = vcmask 875520   ;;  %vm282_vm11 = vcmask 1031168  }
   0xe   : > { %s2320_s14 = sshll.u32 %s3875_s13, 4  ;;  %s2404_s22 = smov 127   ;;  %vm321_vm12 = vcmask 719872  }
   0xf   : > { %s180_s17 = scalar_lea.vmem %s3807_s1, %s2320_s14  ;;  %s2471_s25 = scalar_lea.vmem %s3808_s2, %s2320_s14 }
  0x10   : > { %v2453_v0 = vld [vmem:[%s180_s17] sm:$0xff]  ;;  %v196_v1 = vld [vmem:[%s180_s17 + $0x8] sm:$0xf]  ;;  %s2405_s26 = smov 109   ;;  %s2406_s27 = smov 108  }
  0x11   : > { %436 = vrot.lane.b32.xlu1 %v2453_v0, %s2400_s18  ;;  %199 = vrot.lane.b32.xlu0 %v2453_v0, %s2401_s19  ;;  %v1106_v2 = vmul.f32 %v2453_v0, %v2453_v0  ;;  %v2461_v3 = vld [vmem:[%s180_s17 + $0x8] sm:$0xff]  ;;  %v379_v9 = vld [vmem:[%s2471_s25] sm:$0xff]  ;;  %s2407_s28 = smov 89   ;;  %s2408_s29 = smov 107  }
  0x12   : > { %v1107_v5 = vmul.f32 %v2461_v3, %v2461_v3  ;;  %v2484_v14 = vcombine.high %v379_v9, %v379_v9  ;;  %s2409_s30 = smov 88   ;;  %v380_v27 = vld [vmem:[%s2471_s25 + $0x8] sm:$0xf]  ;;  %s2410_s4 = smov 126  }
  0x13   : > { %v1110_v4 = vcombine.high %v1106_v2, %v1106_v2  ;;  %v1114_v13 = vsel %vm220_vm2, %v1106_v2, 0.0  ;;  %s2412_s5 = smov 87   ;;  %s2413_s6 = smov 69  }
  0x14   : > { %v1111_v7 = vcombine.high %v1107_v5, %v1107_v5  ;;  %3828 = vst [vmem:[#allocation2_spill] sm:$0xff] %v2484_v14  ;;  %v1115_v15 = vrot.slane %v1114_v13, 4  ;;  %v1128_v18 = vsel %vm207_vm0, %v1107_v5, 0.0  ;;  %s2414_s7 = smov 68   ;;  %s2415_s8 = smov 67  }
  0x15   : > { %658 = vrot.lane.b32.xlu1 %v2453_v0, %s2402_s20  ;;  %201 = vrot.lane.b32.xlu0 %v196_v1, %s2401_s19  ;;  %v1121_v6 = vsel %vm207_vm0, %v1110_v4, 0.0  ;;  %v1129_v21 = vrot.slane %v1128_v18, 4  ;;  %s2416_s9 = smov 49   ;;  %s2417_s10 = smov 48  }
  0x16   : > { %v1122_v8 = vrot.slane %v1121_v6, 4  ;;  %v1135_v10 = vsel %vm242_vm1, %v1111_v7, 0.0  ;;  %v1116_v19 = vadd.f32 %v1115_v15, %v1114_v13  ;;  %s2418_s11 = smov 47  }
  0x17   : > { %v1136_v12 = vrot.slane %v1135_v10, 4  ;;  %v1130_v25 = vadd.f32 %v1129_v21, %v1128_v18 }
  0x18   : > { %v1123_v11 = vadd.f32 %v1122_v8, %v1121_v6  ;;  %v1117_v23 = vrot.slane %v1116_v19, 2 }
  0x19   : > { %882 = vrot.lane.b32.xlu1 %v2453_v0, %s2403_s21  ;;  %438 = vrot.lane.b32.xlu0 %v196_v1, %s2400_s18  ;;  %v1137_v17 = vadd.f32 %v1136_v12, %v1135_v10  ;;  %v1131_v30 = vrot.slane %v1130_v25, 2  ;;  %s2322_s18 = smul.u32 12, %s3875_s13 }
  0x1a   : > { %v1124_v16 = vrot.slane %v1123_v11, 2  ;;  %v1118_v28 = vadd.f32 %v1117_v23, %v1116_v19 }
  0x1b   : > { %v1138_v22 = vrot.slane %v1137_v17, 2  ;;  %v1132_v33 = vadd.f32 %v1131_v30, %v1130_v25 }
  0x1c   : > { %v1125_v20 = vadd.f32 %v1124_v16, %v1123_v11  ;;  %v1119_v32 = vrot.slane %v1118_v28, 1 }
  0x1d   : > { %1315 = vrot.lane.b32.xlu1 %v2453_v0, %s2404_s22  ;;  %660 = vrot.lane.b32.xlu0 %v196_v1, %s2402_s20  ;;  %v1139_v26 = vadd.f32 %v1138_v22, %v1137_v17  ;;  %v1133_v36 = vrot.slane %v1132_v33, 1 }
  0x1e   : > { %v1126_v24 = vrot.slane %v1125_v20, 1  ;;  %v2505_v35 = vadd.f32 %v1119_v32, %v1118_v28 }
  0x1f   : > { %v1140_v31 = vrot.slane %v1139_v26, 1  ;;  %v2511_v37 = vadd.f32 %v1133_v36, %v1132_v33 }
  0x20   : > { %v2496_v29 = vadd.f32 %v1126_v24, %v1125_v20 }
  0x21   : > { %1535 = vrot.lane.b32.xlu1 %v2453_v0, %s2405_s26  ;;  %884 = vrot.lane.b32.xlu0 %v2461_v3, %s2403_s21  ;;  %v2501_v34 = vadd.f32 %v1140_v31, %v1139_v26  ;;  %s190_s21 = scalar_lea.vmem %s3809_s3, %s2322_s18 }
  0x25   : > { %1765 = vrot.lane.b32.xlu1 %v2453_v0, %s2406_s27  ;;  %419 = vrot.lane.b32.xlu0 %v379_v9, %s2407_s28 }
  0x29   : > { %1988 = vrot.lane.b32.xlu1 %v2453_v0, %s2408_s29  ;;  %1317 = vrot.lane.b32.xlu0 %v2461_v3, %s2404_s22 }
  0x2d   : > { %421 = vrot.lane.b32.xlu1 %v2484_v14, %s2407_s28  ;;  %1537 = vrot.lane.b32.xlu0 %v2461_v3, %s2405_s26 }
  0x31   : > { %1767 = vrot.lane.b32.xlu0 %v2461_v3, %s2406_s27  ;;  %641 = vrot.lane.b32.xlu1 %v379_v9, %s2409_s30 }
  0x35   : > { %1990 = vrot.lane.b32.xlu0 %v2461_v3, %s2408_s29  ;;  %645 = vrot.lane.b32.xlu1 %v380_v27, %s2409_s30 }
  0x39   : > { %423 = vrot.lane.b32.xlu0 %v380_v27, %s2407_s28  ;;  %1148 = vrot.lane.b32.xlu1 %v2496_v29, %s2404_s22 }
  0x3d   : > { %643 = vrot.lane.b32.xlu0 %v2484_v14, %s2409_s30  ;;  %1152 = vrot.lane.b32.xlu1 %v2501_v34, %s2404_s22 }
  0x41   : > { %1146 = vrot.lane.b32.xlu0 %v2505_v35, %s2404_s22  ;;  %1167 = vrot.lane.b32.xlu1 %v2496_v29, %s2410_s4 }
  0x45   : > { %1150 = vrot.lane.b32.xlu0 %v2511_v37, %s2404_s22  ;;  %1171 = vrot.lane.b32.xlu1 %v2501_v34, %s2410_s4 }
  0x49   : > { %1165 = vrot.lane.b32.xlu0 %v2505_v35, %s2410_s4 }
  0x4d   : > { %1169 = vrot.lane.b32.xlu0 %v2511_v37, %s2410_s4 }
  0x83   : > { %v437_v38 = vpop.permute.xlu1 %436  ;;  %v200_v39 = vpop.permute.xlu0 %199 }
  0x84   : > { %v440_v40 = vrot.slane %v437_v38, 4  ;;  %v203_v41 = vrot.slane %v200_v39, 4 }
  0x86   : > { %v443_v42 = vsel %vm442_vm3, %v440_v40, %v437_v38  ;;  %v206_v43 = vsel %vm205_vm4, %v203_v41, %v200_v39 }
  0x87   : > { %v212_v44 = vmul.f32 %v206_v43, %v2453_v0  ;;  %v659_v45 = vpop.permute.xlu1 %658  ;;  %v202_v46 = vpop.permute.xlu0 %201  ;;  %v2527_v47 = vmul.f32 %v443_v42, %v2453_v0 }
  0x88   : > { %v662_v48 = vrot.slane %v659_v45, 4  ;;  %v204_v2 = vrot.slane %v202_v46, 4 }
  0x89   : > { %v221_v49 = vsel %vm220_vm2, %v212_v44, 0.0  ;;  %v456_v55 = vsel %vm220_vm2, %v2527_v47, 0.0  ;;  %v216_v13 = vcombine.high %v212_v44, %v212_v44 }
  0x8a   : > { %v222_v50 = vrot.slane %v221_v49, 4  ;;  %v665_v51 = vsel %vm664_vm5, %v662_v48, %v659_v45  ;;  %v457_v61 = vrot.slane %v456_v55, 4  ;;  %v208_v15 = vsel %vm207_vm0, %v203_v41, %v204_v2 }
  0x8b   : > { %v670_v52 = vmul.f32 %v665_v51, %v2453_v0  ;;  %v2532_v53 = vpop.permute.xlu1 %882  ;;  %v439_v54 = vpop.permute.xlu0 %438  ;;  %v209_v20 = vsel %vm205_vm4, %v208_v15, %v202_v46  ;;  %v228_v25 = vsel %vm207_vm0, %v216_v13, 0.0 }
  0x8c   : > { %v223_v56 = vadd.f32 %v222_v50, %v221_v49  ;;  %v886_v58 = vrot.slane %v2532_v53, 4  ;;  %v441_v60 = vrot.slane %v439_v54, 4  ;;  %v458_v8 = vadd.f32 %v457_v61, %v456_v55 }
  0x8d   : > { %v678_v57 = vsel %vm220_vm2, %v670_v52, 0.0  ;;  %v2564_v30 = vmul.f32 %v209_v20, %v2461_v3  ;;  %v229_v32 = vrot.slane %v228_v25, 4  ;;  %v674_v39 = vcombine.high %v670_v52, %v670_v52 }
  0x8e   : > { %v679_v59 = vrot.slane %v678_v57, 4  ;;  %v889_v62 = vsel %vm888_vm6, %v886_v58, %v2532_v53  ;;  %v224_v1 = vrot.slane %v223_v56, 2  ;;  %v444_v5 = vsel %vm207_vm0, %v440_v40, %v441_v60 }
  0x8f   : > { %v661_v63 = vpop.permute.xlu0 %660  ;;  %v2543_v4 = vmul.f32 %v889_v62, %v2453_v0  ;;  %v445_v10 = vsel %vm442_vm3, %v444_v5, %v439_v54  ;;  %v459_v24 = vrot.slane %v458_v8, 2  ;;  %v235_v45 = vsel %vm207_vm0, %v2564_v30, 0.0  ;;  %v1316_v53 = vpop.permute.xlu1 %1315 }
  0x90   : > { %v680_v6 = vadd.f32 %v679_v59, %v678_v57  ;;  %v225_v12 = vadd.f32 %v224_v1, %v223_v56  ;;  %v2553_v16 = vmul.f32 %v445_v10, %v2461_v3  ;;  %v663_v26 = vrot.slane %v661_v63, 4 }
  0x91   : > { %v902_v7 = vsel %vm220_vm2, %v2543_v4, 0.0  ;;  %v460_v33 = vadd.f32 %v459_v24, %v458_v8  ;;  %v685_v52 = vsel %vm207_vm0, %v674_v39, 0.0  ;;  %v230_v56 = vadd.f32 %v229_v32, %v228_v25 }
  0x92   : > { %v903_v9 = vrot.slane %v902_v7, 4  ;;  %v470_v17 = vsel %vm207_vm0, %v2553_v16, 0.0  ;;  %v226_v18 = vrot.slane %v225_v12, 1  ;;  %v681_v19 = vrot.slane %v680_v6, 2 }
  0x93   : > { %v2549_v11 = vpop.permute.xlu0 %884  ;;  %v471_v22 = vrot.slane %v470_v17, 4  ;;  %v666_v40 = vsel %vm207_vm0, %v662_v48, %v663_v26  ;;  %v461_v43 = vrot.slane %v460_v33, 1  ;;  %v236_v57 = vrot.slane %v235_v45, 4 }
  0x94   : > { %v904_v21 = vadd.f32 %v903_v9, %v902_v7  ;;  %v2561_v27 = vadd.f32 %v226_v18, %v225_v12  ;;  %v682_v31 = vadd.f32 %v681_v19, %v680_v6  ;;  %v667_v50 = vsel %vm664_vm5, %v666_v40, %v661_v63 }
  0x95   : > { %v472_v28 = vadd.f32 %v471_v22, %v470_v17  ;;  %v2576_v51 = vadd.f32 %v461_v43, %v460_v33  ;;  %v887_v59 = vrot.slane %v2549_v11, 4  ;;  %v898_v60 = vcombine.high %v2543_v4, %v2543_v4 }
  0x96   : > { %274 = vrot.lane.b32.xlu0 %v2561_v27, %s2410_s4  ;;  %254 = vrot.lane.b32.xlu1 %v2561_v27, %s2404_s22  ;;  %v905_v38 = vrot.slane %v904_v21, 2  ;;  %v683_v41 = vrot.slane %v682_v31, 1  ;;  %v2589_v61 = vmul.f32 %v667_v50, %v2461_v3  ;;  %v686_v1 = vrot.slane %v685_v52, 4 }
  0x97   : > { %v2558_v23 = vpop.permute.xlu0 %419  ;;  %v473_v44 = vrot.slane %v472_v28, 2  ;;  %v231_v6 = vrot.slane %v230_v56, 2  ;;  %v890_v7 = vsel %vm207_vm0, %v886_v58, %v887_v59  ;;  %v237_v4 = vadd.f32 %v236_v57, %v235_v45  ;;  %v1536_v45 = vpop.permute.xlu1 %1535 }
  0x98   : > { %3829 = vst [vmem:[#allocation3_spill] sm:$0xff] %v2558_v23  ;;  %v2573_v46 = vadd.f32 %v683_v41, %v682_v31  ;;  %v906_v49 = vadd.f32 %v905_v38, %v904_v21  ;;  %v909_v9 = vsel %vm207_vm0, %v898_v60, 0.0  ;;  %v692_v10 = vsel %vm207_vm0, %v2589_v61, 0.0 }
  0x99   : > { %v474_v55 = vadd.f32 %v473_v44, %v472_v28  ;;  %v232_v15 = vadd.f32 %v231_v6, %v230_v56  ;;  %v687_v18 = vadd.f32 %v686_v1, %v685_v52  ;;  %v891_v58 = vsel %vm888_vm6, %v890_v7, %v2549_v11 }
  0x9a   : > { %710 = vrot.lane.b32.xlu0 %v2573_v46, %s2404_s22  ;;  %488 = vrot.lane.b32.xlu1 %v2576_v51, %s2404_s22  ;;  %v907_v63 = vrot.slane %v906_v49, 1  ;;  %v1319_v19 = vrot.slane %v1316_v53, 4  ;;  %v910_v21 = vrot.slane %v909_v9, 4  ;;  %v693_v22 = vrot.slane %v692_v10, 4 }
  0x9b   : > { %v1318_v36 = vpop.permute.xlu0 %1317  ;;  %v475_v5 = vrot.slane %v474_v55, 1  ;;  %v238_v24 = vrot.slane %v237_v4, 2  ;;  %v2613_v25 = vmul.f32 %v891_v58, %v2461_v3  ;;  %v233_v26 = vrot.slane %v232_v15, 1 }
  0x9c   : > { %v1320_v42 = vrot.slane %v1318_v36, 4  ;;  %v2602_v12 = vadd.f32 %v907_v63, %v906_v49  ;;  %v688_v31 = vrot.slane %v687_v18, 2  ;;  %v911_v44 = vadd.f32 %v910_v21, %v909_v9 }
  0x9d   : > { %v2604_v13 = vadd.f32 %v475_v5, %v474_v55  ;;  %v239_v38 = vadd.f32 %v238_v24, %v237_v4  ;;  %v916_v40 = vsel %vm207_vm0, %v2613_v25, 0.0  ;;  %v2626_v41 = vadd.f32 %v233_v26, %v232_v15 }
  0x9e   : > { %v1323_v54 = vsel %vm262_vm7, %v1318_v36, %v1320_v42  ;;  %729 = vrot.lane.b32.xlu0 %v2573_v46, %s2410_s4  ;;  %507 = vrot.lane.b32.xlu1 %v2576_v51, %s2410_s4  ;;  %v1321_v11 = vsel %vm207_vm0, %v1319_v19, %v1320_v42  ;;  %v694_v36 = vadd.f32 %v693_v22, %v692_v10  ;;  %v1539_v50 = vrot.slane %v1536_v45, 4 }
  0x9f   : > { %v1327_v48 = vmul.f32 %v1323_v54, %v2461_v3  ;;  %v2622_v39 = vpop.permute.xlu0 %1537  ;;  %v689_v43 = vadd.f32 %v688_v31, %v687_v18  ;;  %v1322_v49 = vsel %vm262_vm7, %v1316_v53, %v1321_v11  ;;  %v917_v52 = vrot.slane %v916_v40, 4 }
  0xa0   : > { %v1540_v54 = vrot.slane %v2622_v39, 4  ;;  %v695_v55 = vrot.slane %v694_v36, 2  ;;  %v912_v59 = vrot.slane %v911_v44, 2  ;;  %v2636_v60 = vmul.f32 %v1322_v49, %v2453_v0 }
  0xa1   : > { %v1348_v62 = vsel %vm207_vm0, %v1327_v48, 0.0  ;;  %v1331_v32 = vcombine.high %v1327_v48, %v1327_v48  ;;  %v240_v48 = vrot.slane %v239_v38, 1  ;;  %v690_v57 = vrot.slane %v689_v43, 1 }
  0xa2   : > { %v1349_v2 = vrot.slane %v1348_v62, 4  ;;  %934 = vrot.lane.b32.xlu0 %v2602_v12, %s2404_s22  ;;  %492 = vrot.lane.b32.xlu1 %v2604_v13, %s2404_s22  ;;  %v1541_v63 = vsel %vm207_vm0, %v1539_v50, %v1540_v54  ;;  %v918_v1 = vadd.f32 %v917_v52, %v916_v40  ;;  %v696_v5 = vadd.f32 %v695_v55, %v694_v36 }
  0xa3   : > { %v1355_v42 = vsel %vm242_vm1, %v1331_v32, 0.0  ;;  %v2649_v6 = vadd.f32 %v690_v57, %v689_v43  ;;  %v913_v7 = vadd.f32 %v912_v59, %v911_v44  ;;  %v1543_v9 = vsel %vm1542_vm8, %v1536_v45, %v1541_v63 }
  0xa4   : > { %v1350_v8 = vadd.f32 %v1349_v2, %v1348_v62  ;;  %v1356_v56 = vrot.slane %v1355_v42, 4  ;;  %v217_v62 = vcombine.high %v2564_v30, %v2564_v30  ;;  %v2647_v2 = vadd.f32 %v240_v48, %v239_v38 }
  0xa5   : > { %v1334_v30 = vsel %vm220_vm2, %v2636_v60, 0.0  ;;  %v697_v10 = vrot.slane %v696_v5, 1  ;;  %v919_v15 = vrot.slane %v918_v1, 2  ;;  %v2660_v53 = vmul.f32 %v1543_v9, %v2453_v0  ;;  %v1768_v9 = vpop.permute.xlu0 %1767 }
  0xa6   : > { %v1351_v17 = vrot.slane %v1350_v8, 2  ;;  %953 = vrot.lane.b32.xlu0 %v2602_v12, %s2410_s4  ;;  %511 = vrot.lane.b32.xlu1 %v2604_v13, %s2410_s4  ;;  %v243_v4 = vsel %vm242_vm1, %v217_v62, 0.0  ;;  %v914_v58 = vrot.slane %v913_v7, 1  ;;  %v452_v21 = vcombine.high %v2527_v47, %v2527_v47 }
  0xa7   : > { %v244_v18 = vrot.slane %v243_v4, 4  ;;  %v2670_v22 = vadd.f32 %v697_v10, %v696_v5  ;;  %v920_v24 = vadd.f32 %v919_v15, %v918_v1  ;;  %v899_v49 = vcombine.high %v2613_v25, %v2613_v25 }
  0xa8   : > { %v1352_v20 = vadd.f32 %v1351_v17, %v1350_v8  ;;  %v1357_v8 = vadd.f32 %v1356_v56, %v1355_v42  ;;  %v1335_v17 = vrot.slane %v1334_v30, 4  ;;  %v463_v47 = vsel %vm207_vm0, %v452_v21, 0.0 }
  0xa9   : > { %v245_v32 = vadd.f32 %v244_v18, %v243_v4  ;;  %v921_v36 = vrot.slane %v920_v24, 1  ;;  %v464_v42 = vrot.slane %v463_v47, 4  ;;  %v453_v50 = vcombine.high %v2553_v16, %v2553_v16  ;;  %v1766_v4 = vpop.permute.xlu1 %1765 }
  0xaa   : > { %v1353_v28 = vrot.slane %v1352_v20, 1  ;;  %256 = vrot.lane.b32.xlu1 %v2626_v41, %s2404_s22  ;;  %v1358_v19 = vrot.slane %v1357_v8, 2  ;;  %v1336_v26 = vadd.f32 %v1335_v17, %v1334_v30  ;;  %v923_v25 = vsel %vm242_vm1, %v899_v49, 0.0 }
  0xab   : > { %v246_v45 = vrot.slane %v245_v32, 2  ;;  %v2690_v52 = vadd.f32 %v921_v36, %v920_v24  ;;  %v477_v62 = vsel %vm242_vm1, %v453_v50, 0.0  ;;  %v465_v1 = vadd.f32 %v464_v42, %v463_v47 }
  0xac   : > { %v2620_v33 = vadd.f32 %v1353_v28, %v1352_v20  ;;  %v675_v20 = vcombine.high %v2589_v61, %v2589_v61  ;;  %v2672_v28 = vadd.f32 %v914_v58, %v913_v7  ;;  %v1359_v31 = vadd.f32 %v1358_v19, %v1357_v8 }
  0xad   : > { %v1555_v61 = vsel %vm220_vm2, %v2660_v53, 0.0  ;;  %v1337_v38 = vrot.slane %v1336_v26, 2  ;;  %v247_v57 = vadd.f32 %v246_v45, %v245_v32  ;;  %v924_v5 = vrot.slane %v923_v25, 4 }
  0xae   : > { %1370 = vrot.lane.b32.xlu0 %v2620_v33, %s2404_s22  ;;  %276 = vrot.lane.b32.xlu1 %v2626_v41, %s2410_s4  ;;  %v699_v11 = vsel %vm242_vm1, %v675_v20, 0.0  ;;  %v1556_v40 = vrot.slane %v1555_v61, 4  ;;  %v1360_v44 = vrot.slane %v1359_v31, 1  ;;  %v1544_v7 = vsel %vm1542_vm8, %v2622_v39, %v1540_v54 }
  0xaf   : > { %v700_v43 = vrot.slane %v699_v11, 4  ;;  %v1338_v48 = vadd.f32 %v1337_v38, %v1336_v26  ;;  %v248_v8 = vrot.slane %v247_v57, 1  ;;  %v1330_v10 = vcombine.high %v2636_v60, %v2636_v60 }
  0xb0   : > { %v1557_v55 = vadd.f32 %v1556_v40, %v1555_v61  ;;  %v2692_v56 = vadd.f32 %v1360_v44, %v1359_v31  ;;  %v478_v15 = vrot.slane %v477_v62, 4  ;;  %v1769_v17 = vrot.slane %v1766_v4, 4 }
  0xb1   : > { %v701_v59 = vadd.f32 %v700_v43, %v699_v11  ;;  %v1339_v63 = vrot.slane %v1338_v48, 1  ;;  %v1548_v18 = vmul.f32 %v1544_v7, %v2461_v3  ;;  %v466_v54 = vrot.slane %v465_v1, 2 }
  0xb2   : > { %1389 = vrot.lane.b32.xlu0 %v2620_v33, %s2410_s4  ;;  %712 = vrot.lane.b32.xlu1 %v2649_v6, %s2404_s22  ;;  %v1558_v16 = vrot.slane %v1557_v55, 2  ;;  %v2713_v19 = vadd.f32 %v248_v8, %v247_v57  ;;  %v925_v21 = vadd.f32 %v924_v5, %v923_v25  ;;  %v1770_v24 = vrot.slane %v1768_v9, 4 }
  0xb3   : > { %v702_v30 = vrot.slane %v701_v59, 2  ;;  %v2711_v58 = vadd.f32 %v1339_v63, %v1338_v48  ;;  %v1341_v60 = vsel %vm207_vm0, %v1330_v10, 0.0  ;;  %v1569_v26 = vsel %vm207_vm0, %v1548_v18, 0.0 }
  0xb4   : > { %v1559_v39 = vadd.f32 %v1558_v16, %v1557_v55  ;;  %v467_v32 = vadd.f32 %v466_v54, %v465_v1  ;;  %v479_v61 = vadd.f32 %v478_v15, %v477_v62  ;;  %v926_v47 = vrot.slane %v925_v21, 2  ;;  %v1989_v54 = vpop.permute.xlu1 %1988 }
  0xb5   : > { %v703_v20 = vadd.f32 %v702_v30, %v701_v59  ;;  %v1771_v36 = vsel %vm207_vm0, %v1769_v17, %v1770_v24  ;;  %v1342_v38 = vrot.slane %v1341_v60, 4  ;;  %v1551_v40 = vcombine.high %v2660_v53, %v2660_v53 }
  0xb6   : > { %258 = vrot.lane.b32.xlu0 %v2647_v2, %s2404_s22  ;;  %731 = vrot.lane.b32.xlu1 %v2649_v6, %s2410_s4  ;;  %v1560_v31 = vrot.slane %v1559_v39, 1  ;;  %v1570_v43 = vrot.slane %v1569_v26, 4  ;;  %v468_v45 = vrot.slane %v467_v32, 1  ;;  %v1772_v49 = vsel %vm303_vm9, %v1766_v4, %v1771_v36 }
  0xb7   : > { %v704_v11 = vrot.slane %v703_v20, 1  ;;  %v480_v42 = vrot.slane %v479_v61, 2  ;;  %v927_v48 = vadd.f32 %v926_v47, %v925_v21  ;;  %v1343_v55 = vadd.f32 %v1342_v38, %v1341_v60 }
  0xb8   : > { %v2728_v44 = vadd.f32 %v1560_v31, %v1559_v39  ;;  %v1552_v57 = vcombine.high %v1548_v18, %v1548_v18  ;;  %v1562_v53 = vsel %vm207_vm0, %v1551_v40, 0.0  ;;  %v1776_v59 = vmul.f32 %v1772_v49, %v2453_v0 }
  0xb9   : > { %v2731_v50 = vadd.f32 %v704_v11, %v703_v20  ;;  %v1571_v25 = vadd.f32 %v1570_v43, %v1569_v26  ;;  %v2739_v62 = vadd.f32 %v468_v45, %v467_v32  ;;  %v481_v63 = vadd.f32 %v480_v42, %v479_v61  ;;  %v1991_v20 = vpop.permute.xlu0 %1990  ;;  %v2764_v42 = vpop.permute.xlu1 %421 }
  0xba   : > { %278 = vrot.lane.b32.xlu0 %v2647_v2, %s2410_s4  ;;  %936 = vrot.lane.b32.xlu1 %v2672_v28, %s2404_s22  ;;  %v928_v16 = vrot.slane %v927_v48, 1  ;;  %v1773_v1 = vsel %vm303_vm9, %v1768_v9, %v1770_v24  ;;  %v1344_v5 = vrot.slane %v1343_v55, 2  ;;  %v1563_v7 = vrot.slane %v1562_v53, 4  ;;  %3830 = vst [vmem:[#allocation4_spill] sm:$0xff] %v2764_v42 }
  0xbb   : > { %v1576_v8 = vsel %vm242_vm1, %v1552_v57, 0.0  ;;  %v1784_v30 = vsel %vm220_vm2, %v1776_v59, 0.0  ;;  %v1777_v4 = vmul.f32 %v1773_v1, %v2461_v3  ;;  %v482_v10 = vrot.slane %v481_v63, 1 }
  0xbc   : > { %v1572_v15 = vrot.slane %v1571_v25, 2  ;;  %v1577_v17 = vrot.slane %v1576_v8, 4  ;;  %v2749_v18 = vadd.f32 %v928_v16, %v927_v48  ;;  %v1345_v9 = vadd.f32 %v1344_v5, %v1343_v55 }
  0xbd   : > { %v1564_v39 = vadd.f32 %v1563_v7, %v1562_v53  ;;  %v1785_v21 = vrot.slane %v1784_v30, 4  ;;  %v1992_v24 = vrot.slane %v1989_v54, 4  ;;  %v1798_v60 = vsel %vm207_vm0, %v1777_v4, 0.0  ;;  %v2775_v5 = vpop.permute.xlu0 %423 }
  0xbe   : > { %714 = vrot.lane.b32.xlu0 %v2670_v22, %s2404_s22  ;;  %955 = vrot.lane.b32.xlu1 %v2672_v28, %s2410_s4  ;;  %v2756_v26 = vadd.f32 %v482_v10, %v481_v63  ;;  %v1573_v31 = vadd.f32 %v1572_v15, %v1571_v25  ;;  %v1780_v32 = vcombine.high %v1776_v59, %v1776_v59  ;;  %v1346_v61 = vrot.slane %v1345_v9, 1 }
  0xbf   : > { %v1993_v11 = vrot.slane %v1991_v20, 4  ;;  %v1565_v47 = vrot.slane %v1564_v39, 2  ;;  %v1578_v36 = vadd.f32 %v1577_v17, %v1576_v8  ;;  %v1786_v38 = vadd.f32 %v1785_v21, %v1784_v30  ;;  %3831 = vst [vmem:[#allocation5_spill] sm:$0xff] %v2775_v5 }
  0xc0   : > { %v1799_v43 = vrot.slane %v1798_v60, 4  ;;  %v1574_v45 = vrot.slane %v1573_v31, 1  ;;  %v1791_v49 = vsel %vm207_vm0, %v1780_v32, 0.0  ;;  %v1781_v48 = vcombine.high %v1777_v4, %v1777_v4  ;;  %v2779_v4 = vpop.permute.xlu1 %641 }
  0xc1   : > { %v1994_v40 = vsel %vm207_vm0, %v1992_v24, %v1993_v11  ;;  %v2766_v55 = vadd.f32 %v1346_v61, %v1345_v9  ;;  %v1566_v57 = vadd.f32 %v1565_v47, %v1564_v39  ;;  %v1579_v53 = vrot.slane %v1578_v36, 2  ;;  %3832 = vst [vmem:[#allocation6_spill] sm:$0xff] %v2779_v4 }
  0xc2   : > { %733 = vrot.lane.b32.xlu0 %v2670_v22, %s2410_s4  ;;  %1372 = vrot.lane.b32.xlu1 %v2692_v56, %s2404_s22  ;;  %v1996_v59 = vsel %vm1995_vm10, %v1989_v54, %v1994_v40  ;;  %v1787_v25 = vrot.slane %v1786_v38, 2  ;;  %v1792_v63 = vrot.slane %v1791_v49, 4  ;;  %v1800_v16 = vadd.f32 %v1799_v43, %v1798_v60 }
  0xc3   : > { %v2773_v1 = vadd.f32 %v1574_v45, %v1573_v31  ;;  %v1805_v7 = vsel %vm242_vm1, %v1781_v48, 0.0  ;;  %v2000_v8 = vmul.f32 %v1996_v59, %v2453_v0  ;;  %v1567_v30 = vrot.slane %v1566_v57, 1 }
  0xc4   : > { %v1580_v10 = vadd.f32 %v1579_v53, %v1578_v36  ;;  %v1997_v15 = vsel %vm1995_vm10, %v1991_v20, %v1993_v11  ;;  %v1788_v17 = vadd.f32 %v1787_v25, %v1786_v38  ;;  %v1793_v9 = vadd.f32 %v1792_v63, %v1791_v49  ;;  %v2792_v20 = vpop.permute.xlu0 %643  ;;  %v2796_v32 = vpop.permute.xlu1 %645 }
  0xc5   : > { %v1806_v39 = vrot.slane %v1805_v7, 4  ;;  %v1801_v54 = vrot.slane %v1800_v16, 2  ;;  %v2001_v21 = vmul.f32 %v1997_v15, %v2461_v3  ;;  %v2787_v24 = vadd.f32 %v1567_v30, %v1566_v57  ;;  %3833 = vst [vmem:[#allocation7_spill] sm:$0xff] %v2792_v20  ;;  %3834 = vst [vmem:[#allocation8_spill] sm:$0xff] %v2796_v32 }
  0xc6   : > { %938 = vrot.lane.b32.xlu0 %v2690_v52, %s2404_s22  ;;  %1391 = vrot.lane.b32.xlu1 %v2692_v56, %s2410_s4  ;;  %v1581_v0 = vrot.slane %v1580_v10, 1  ;;  %v2008_v60 = vsel %vm220_vm2, %v2000_v8, 0.0  ;;  %v1789_v31 = vrot.slane %v1788_v17, 1  ;;  %v1794_v61 = vrot.slane %v1793_v9, 2 }
  0xc7   : > { %v1802_v11 = vadd.f32 %v1801_v54, %v1800_v16  ;;  %v2009_v47 = vrot.slane %v2008_v60, 4  ;;  %v2022_v3 = vsel %vm207_vm0, %v2001_v21, 0.0  ;;  %v1807_v38 = vadd.f32 %v1806_v39, %v1805_v7 }
  0xc8   : > { %v2799_v36 = vadd.f32 %v1581_v0, %v1580_v10  ;;  %v2803_v40 = vadd.f32 %v1789_v31, %v1788_v17  ;;  %v2004_v43 = vcombine.high %v2000_v8, %v2000_v8  ;;  %v1795_v45 = vadd.f32 %v1794_v61, %v1793_v9  ;;  %v1147_v48 = vpop.permute.xlu0 %1146  ;;  %v2807_v59 = vpop.permute.xlu1 %1148 }
  0xc9   : > { %v2023_v49 = vrot.slane %v2022_v3, 4  ;;  %v1803_v57 = vrot.slane %v1802_v11, 1  ;;  %v2010_v53 = vadd.f32 %v2009_v47, %v2008_v60  ;;  %v1808_v25 = vrot.slane %v1807_v38, 2 }
  0xca   : > { %957 = vrot.lane.b32.xlu0 %v2690_v52, %s2410_s4  ;;  %260 = vrot.lane.b32.xlu1 %v2713_v19, %s2404_s22  ;;  %3835 = vst [vmem:[#allocation9_spill] sm:$0xff] %v2803_v40  ;;  %v2005_v63 = vcombine.high %v2001_v21, %v2001_v21  ;;  %v2015_v16 = vsel %vm207_vm0, %v2004_v43, 0.0  ;;  %v1796_v7 = vrot.slane %v1795_v45, 1  ;;  %vm367_vm5 = vcmask 728064  }
  0xcb   : > { %v2024_v8 = vadd.f32 %v2023_v49, %v2022_v3  ;;  %v2814_v30 = vadd.f32 %v1803_v57, %v1802_v11  ;;  %v2011_v10 = vrot.slane %v2010_v53, 2  ;;  %v1809_v15 = vadd.f32 %v1808_v25, %v1807_v38 }
  0xcc   : > { %v2016_v17 = vrot.slane %v2015_v16, 4  ;;  %v2029_v9 = vsel %vm242_vm1, %v2005_v63, 0.0  ;;  %v1151_v39 = vpop.permute.xlu0 %1150  ;;  %v2821_v54 = vadd.f32 %v1796_v7, %v1795_v45  ;;  %v1153_v21 = vpop.permute.xlu1 %1152 }
  0xcd   : > { %3836 = vst [vmem:[#allocation10_spill] sm:$0xff] %v2814_v30  ;;  %v2012_v0 = vadd.f32 %v2011_v10, %v2010_v53  ;;  %v2025_v60 = vrot.slane %v2024_v8, 2  ;;  %v2030_v31 = vrot.slane %v2029_v9, 4  ;;  %v1810_v61 = vrot.slane %v1809_v15, 1 }
  0xce   : > { %1366 = vrot.lane.b32.xlu0 %v2711_v58, %s2404_s22  ;;  %280 = vrot.lane.b32.xlu1 %v2713_v19, %s2410_s4  ;;  %v2017_v11 = vadd.f32 %v2016_v17, %v2015_v16 }
  0xcf   : > { %v2013_v3 = vrot.slane %v2012_v0, 1  ;;  %v2026_v38 = vadd.f32 %v2025_v60, %v2024_v8  ;;  %v2827_v43 = vadd.f32 %v1810_v61, %v1809_v15  ;;  %v2031_v57 = vadd.f32 %v2030_v31, %v2029_v9 }
  0xd0   : > { %v1166_v47 = vpop.permute.xlu0 %1165  ;;  %v1168_v49 = vpop.permute.xlu1 %1167  ;;  %v2018_v45 = vrot.slane %v2017_v11, 2  ;;  %v1154_v60 = vsel %vm262_vm7, %v1147_v48, %v2807_v59 }
  0xd1   : > { %3837 = vst [vmem:[#allocation11_spill] sm:$0xff] %v2827_v43  ;;  %v2833_v53 = vadd.f32 %v2013_v3, %v2012_v0  ;;  %v2027_v25 = vrot.slane %v2026_v38, 1  ;;  %v2032_v16 = vrot.slane %v2031_v57, 2 }
  0xd2   : > { %1385 = vrot.lane.b32.xlu0 %v2711_v58, %s2410_s4  ;;  %716 = vrot.lane.b32.xlu1 %v2731_v50, %s2404_s22  ;;  %v2019_v63 = vadd.f32 %v2018_v45, %v2017_v11  ;;  %v1161_v11 = vadd.f32 %v1154_v60, %v2505_v35  ;;  %v1173_v45 = vsel %vm282_vm11, %v1166_v47, %v1168_v49 }
  0xd3   : > { %3838 = vst [vmem:[#allocation12_spill] sm:$0xff] %v2833_v53  ;;  %v2839_v10 = vadd.f32 %v2027_v25, %v2026_v38  ;;  %v2033_v17 = vadd.f32 %v2032_v16, %v2031_v57  ;;  %v1156_v38 = vsel %vm262_vm7, %v1151_v39, %v1153_v21  ;;  %v1155_v16 = vsel %vm262_vm7, %v2807_v59, %v1151_v39 }
  0xd4   : > { %v1170_v7 = vpop.permute.xlu0 %1169  ;;  %v1172_v8 = vpop.permute.xlu1 %1171  ;;  %v2020_v15 = vrot.slane %v2019_v63, 1  ;;  %v1163_v25 = vadd.f32 %v1156_v38, %v2511_v37  ;;  %v2869_v35 = vadd.f32 %v1173_v45, %v1161_v11  ;;  %v1164_v59 = vadd.f32 %v1153_v21, %v2501_v34 }
  0xd5   : > { %3839 = vst [vmem:[#allocation13_spill] sm:$0xff] %v2839_v10  ;;  %v2034_v61 = vrot.slane %v2033_v17, 1  ;;  %v1175_v47 = vsel %vm282_vm11, %v1170_v7, %v1172_v8 }
  0xd6   : > { %1587 = vrot.lane.b32.xlu0 %v2728_v44, %s2404_s22  ;;  %735 = vrot.lane.b32.xlu1 %v2731_v50, %s2410_s4  ;;  %v2847_v31 = vadd.f32 %v2020_v15, %v2019_v63  ;;  %v2883_v60 = vadd.f32 %v1175_v47, %v1163_v25 }
  0xd7   : > { %v2860_v48 = vadd.f32 %v2034_v61, %v2033_v17  ;;  %v1162_v17 = vadd.f32 %v1155_v16, %v2496_v29  ;;  %v1174_v61 = vsel %vm282_vm11, %v1168_v49, %v1170_v7  ;;  %v1183_v49 = vadd.f32 %v1172_v8, %v1164_v59 }
  0xd8   : > { %3840 = vst [vmem:[#allocation14_spill] sm:$0xff] %v2847_v31 }
  0xd9   : > { %3841 = vst [vmem:[#allocation15_spill] sm:$0xff] %v2860_v48  ;;  %v2895_v38 = vadd.f32 %v1174_v61, %v1162_v17 }
  0xda   : > { %490 = vrot.lane.b32.xlu0 %v2739_v62, %s2404_s22  ;;  %940 = vrot.lane.b32.xlu1 %v2749_v18, %s2404_s22 }
  0xdb   : > { %3842 = vst [vmem:[#allocation16_spill] sm:$0xff] %v2895_v38 }
  0xde   : > { %509 = vrot.lane.b32.xlu0 %v2739_v62, %s2410_s4  ;;  %959 = vrot.lane.b32.xlu1 %v2749_v18, %s2410_s4 }
  0xe2   : > { %494 = vrot.lane.b32.xlu0 %v2756_v26, %s2404_s22  ;;  %1368 = vrot.lane.b32.xlu1 %v2766_v55, %s2404_s22 }
  0xe6   : > { %513 = vrot.lane.b32.xlu0 %v2756_v26, %s2410_s4  ;;  %1387 = vrot.lane.b32.xlu1 %v2766_v55, %s2410_s4 }
  0xea   : > { %1591 = vrot.lane.b32.xlu0 %v2773_v1, %s2404_s22  ;;  %1589 = vrot.lane.b32.xlu1 %v2787_v24, %s2404_s22 }
  0xee   : > { %1606 = vrot.lane.b32.xlu0 %v2728_v44, %s2410_s4  ;;  %1593 = vrot.lane.b32.xlu1 %v2799_v36, %s2404_s22 }
  0xf2   : > { %1610 = vrot.lane.b32.xlu0 %v2773_v1, %s2410_s4  ;;  %1608 = vrot.lane.b32.xlu1 %v2787_v24, %s2410_s4 }
  0xf6   : > { %1816 = vrot.lane.b32.xlu0 %v2803_v40, %s2404_s22  ;;  %1612 = vrot.lane.b32.xlu1 %v2799_v36, %s2410_s4 }
  0xfa   : > { %1820 = vrot.lane.b32.xlu0 %v2814_v30, %s2404_s22  ;;  %1818 = vrot.lane.b32.xlu1 %v2821_v54, %s2404_s22 }
  0xfe   : > { %1835 = vrot.lane.b32.xlu0 %v2803_v40, %s2410_s4  ;;  %1822 = vrot.lane.b32.xlu1 %v2827_v43, %s2404_s22 }
 0x102   : > { %1839 = vrot.lane.b32.xlu0 %v2814_v30, %s2410_s4  ;;  %1837 = vrot.lane.b32.xlu1 %v2821_v54, %s2410_s4 }
 0x106   : > { %2040 = vrot.lane.b32.xlu0 %v2833_v53, %s2404_s22  ;;  %1841 = vrot.lane.b32.xlu1 %v2827_v43, %s2410_s4 }
 0x108   : > { %v275_v9 = vpop.permute.xlu0 %274  ;;  %v255_v0 = vpop.permute.xlu1 %254 }
 0x10a   : > { %2044 = vrot.lane.b32.xlu0 %v2839_v10, %s2404_s22  ;;  %2042 = vrot.lane.b32.xlu1 %v2847_v31, %s2404_s22 }
 0x10c   : > { %v2854_v3 = vpop.permute.xlu0 %710  ;;  %v2858_v57 = vpop.permute.xlu1 %488 }
 0x10e   : > { %2059 = vrot.lane.b32.xlu0 %v2833_v53, %s2410_s4  ;;  %2046 = vrot.lane.b32.xlu1 %v2860_v48, %s2404_s22 }
 0x110   : > { %v2867_v63 = vpop.permute.xlu0 %729  ;;  %v2874_v15 = vpop.permute.xlu1 %507 }
 0x112   : > { %2063 = vrot.lane.b32.xlu0 %v2839_v10, %s2410_s4  ;;  %2061 = vrot.lane.b32.xlu1 %v2847_v31, %s2410_s4 }
 0x114   : > { %v2881_v37 = vpop.permute.xlu0 %934  ;;  %v2886_v11 = vpop.permute.xlu1 %492 }
 0x116   : > { %1187 = vrot.lane.b32.xlu0 %v2869_v35, %s2406_s27  ;;  %2065 = vrot.lane.b32.xlu1 %v2860_v48, %s2410_s4 }
 0x118   : > { %v2893_v39 = vpop.permute.xlu0 %953  ;;  %v2897_v29 = vpop.permute.xlu1 %511 }
 0x11a   : > { %1191 = vrot.lane.b32.xlu0 %v2883_v60, %s2406_s27  ;;  %1189 = vrot.lane.b32.xlu1 %v2895_v38, %s2406_s27 }
 0x11c   : > { %v257_v45 = vpop.permute.xlu1 %256 }
 0x11d   : > { %v263_v25 = vsel %vm262_vm7, %v255_v0, %v257_v45 }
 0x11e   : > { %1204 = vrot.lane.b32.xlu0 %v2895_v38, %s2409_s30  ;;  %1202 = vrot.lane.b32.xlu1 %v2869_v35, %s2409_s30  ;;  %v270_v21 = vadd.f32 %v263_v25, %v2561_v27 }
 0x120   : > { %v2903_v7 = vpop.permute.xlu0 %1370  ;;  %v277_v16 = vpop.permute.xlu1 %276 }
 0x121   : > { %v283_v47 = vsel %vm282_vm11, %v275_v9, %v277_v16 }
 0x122   : > { %1208 = vrot.lane.b32.xlu0 %v1183_v49, %s2409_s30  ;;  %v2913_v17 = vadd.f32 %v283_v47, %v270_v21  ;;  %1206 = vrot.lane.b32.xlu1 %v2883_v60, %s2409_s30 }
 0x124   : > { %v2909_v34 = vpop.permute.xlu0 %1389  ;;  %3843 = vst [vmem:[#allocation17_spill] sm:$0xff] %v2913_v17  ;;  %v713_v0 = vpop.permute.xlu1 %712 }
 0x126   : > { %297 = vrot.lane.b32.xlu0 %v2913_v17, %s2406_s27 }
 0x128   : > { %v2917_v8 = vpop.permute.xlu0 %258  ;;  %v732_v49 = vpop.permute.xlu1 %731 }
 0x129   : > { %v264_v61 = vsel %vm262_vm7, %v257_v45, %v2917_v8 }
 0x12a   : > { %v271_v59 = vadd.f32 %v264_v61, %v2626_v41 }
 0x12c   : > { %v2924_v27 = vpop.permute.xlu0 %278  ;;  %v937_v47 = vpop.permute.xlu1 %936 }
 0x12d   : > { %v284_v9 = vsel %vm282_vm11, %v277_v16, %v2924_v27 }
 0x12e   : > { %v2928_v25 = vadd.f32 %v284_v9, %v271_v59 }
 0x130   : > { %3844 = vst [vmem:[#allocation18_spill] sm:$0xff] %v2928_v25  ;;  %v2930_v21 = vpop.permute.xlu0 %714  ;;  %299 = vrot.lane.b32.xlu1 %v2928_v25, %s2406_s27  ;;  %315 = vrot.lane.b32.xlu0 %v2928_v25, %s2409_s30  ;;  %v956_v41 = vpop.permute.xlu1 %955 }
 0x134   : > { %v2936_v45 = vpop.permute.xlu0 %733  ;;  %313 = vrot.lane.b32.xlu1 %v2913_v17, %s2409_s30  ;;  %v2942_v16 = vpop.permute.xlu1 %1372 }
 0x138   : > { %v2940_v61 = vpop.permute.xlu0 %938  ;;  %v2946_v9 = vpop.permute.xlu1 %1391 }
 0x13c   : > { %v2944_v59 = vpop.permute.xlu0 %957  ;;  %v2950_v4 = vpop.permute.xlu1 %260 }
 0x13d   : > { %v273_v20 = vadd.f32 %v2950_v4, %v2713_v19 }
 0x140   : > { %v2948_v32 = vpop.permute.xlu0 %1366  ;;  %v2956_v23 = vpop.permute.xlu1 %280 }
 0x141   : > { %v293_v42 = vadd.f32 %v2956_v23, %v273_v20 }
 0x143   : > { %319 = vrot.lane.b32.xlu0 %v293_v42, %s2409_s30 }
 0x144   : > { %v2954_v5 = vpop.permute.xlu0 %1385  ;;  %v2962_v48 = vpop.permute.xlu1 %716 }
 0x148   : > { %v2960_v14 = vpop.permute.xlu0 %1587  ;;  %v2964_v17 = vpop.permute.xlu1 %735 }
 0x14c   : > { %v491_v25 = vpop.permute.xlu0 %490  ;;  %v2972_v53 = vpop.permute.xlu1 %940 }
 0x14d   : > { %v496_v31 = vsel %vm262_vm7, %v2858_v57, %v491_v25  ;;  %v497_v19 = vsel %vm262_vm7, %v491_v25, %v2886_v11 }
 0x14e   : > { %v503_v10 = vadd.f32 %v496_v31, %v2576_v51  ;;  %v504_v43 = vadd.f32 %v497_v19, %v2739_v62  ;;  %v718_v51 = vsel %vm262_vm7, %v2854_v3, %v713_v0  ;;  %v737_v31 = vsel %vm282_vm11, %v2867_v63, %v732_v49 }
 0x150   : > { %v510_v20 = vpop.permute.xlu0 %509  ;;  %v2988_v62 = vpop.permute.xlu1 %959 }
 0x151   : > { %v515_v42 = vsel %vm282_vm11, %v2874_v15, %v510_v20  ;;  %v516_v30 = vsel %vm282_vm11, %v510_v20, %v2897_v29  ;;  %v719_v15 = vsel %vm262_vm7, %v713_v0, %v2930_v21 }
 0x152   : > { %v2978_v40 = vadd.f32 %v515_v42, %v503_v10  ;;  %v2980_v38 = vadd.f32 %v516_v30, %v504_v43  ;;  %v725_v30 = vadd.f32 %v718_v51, %v2573_v46  ;;  %v726_v46 = vadd.f32 %v719_v15, %v2649_v6 }
 0x153   : > { %v728_v42 = vadd.f32 %v2962_v48, %v2731_v50  ;;  %v942_v6 = vsel %vm262_vm7, %v2881_v37, %v937_v47  ;;  %v961_v50 = vsel %vm282_vm11, %v2893_v39, %v956_v41 }
 0x154   : > { %v495_v57 = vpop.permute.xlu0 %494  ;;  %529 = vrot.lane.b32.xlu1 %v2978_v40, %s2406_s27  ;;  %531 = vrot.lane.b32.xlu0 %v2980_v38, %s2406_s27  ;;  %v3000_v3 = vpop.permute.xlu1 %1368  ;;  %v3002_v19 = vadd.f32 %v737_v31, %v725_v30  ;;  %v962_v30 = vsel %vm282_vm11, %v956_v41, %v2944_v59  ;;  %v949_v15 = vadd.f32 %v942_v6, %v2602_v12 }
 0x155   : > { %v506_v10 = vadd.f32 %v495_v57, %v2756_v26  ;;  %v738_v26 = vsel %vm282_vm11, %v732_v49, %v2936_v45  ;;  %v943_v49 = vsel %vm262_vm7, %v937_v47, %v2940_v61  ;;  %v265_v12 = vsel %vm262_vm7, %v2917_v8, %v2950_v4 }
 0x156   : > { %v3014_v0 = vadd.f32 %v738_v26, %v726_v46  ;;  %v3044_v47 = vadd.f32 %v961_v50, %v949_v15  ;;  %v285_v41 = vsel %vm282_vm11, %v2924_v27, %v2956_v23  ;;  %v952_v6 = vadd.f32 %v2972_v53, %v2749_v18 }
 0x157   : > { %v1376_v4 = vsel %vm262_vm7, %v2903_v7, %v2942_v16  ;;  %v498_v23 = vsel %vm262_vm7, %v2886_v11, %v495_v57  ;;  %v1395_v27 = vsel %vm282_vm11, %v2909_v34, %v2946_v9  ;;  %v720_v11 = vsel %vm262_vm7, %v2930_v21, %v2962_v48 }
 0x158   : > { %v514_v43 = vpop.permute.xlu0 %513  ;;  %546 = vrot.lane.b32.xlu1 %v2980_v38, %s2409_s30  ;;  %544 = vrot.lane.b32.xlu0 %v2978_v40, %s2409_s30  ;;  %v3012_v20 = vpop.permute.xlu1 %1387  ;;  %v971_v18 = vadd.f32 %v2988_v62, %v952_v6  ;;  %v1383_v50 = vadd.f32 %v1376_v4, %v2620_v33  ;;  %v727_v33 = vadd.f32 %v720_v11, %v2670_v22 }
 0x159   : > { %v525_v25 = vadd.f32 %v514_v43, %v506_v10  ;;  %v747_v10 = vadd.f32 %v2964_v17, %v728_v42  ;;  %v272_v42 = vadd.f32 %v265_v12, %v2647_v2  ;;  %v944_v48 = vsel %vm262_vm7, %v2940_v61, %v2972_v53 }
 0x15a   : > { %v963_v22 = vsel %vm282_vm11, %v2944_v59, %v2988_v62  ;;  %v1375_v53 = vsel %vm262_vm7, %v3000_v3, %v2903_v7  ;;  %v1374_v7 = vsel %vm262_vm7, %v2948_v32, %v3000_v3 }
 0x15b   : > { %v3078_v2 = vadd.f32 %v285_v41, %v272_v42  ;;  %v1382_v59 = vadd.f32 %v1375_v53, %v2766_v55  ;;  %v1393_v55 = vsel %vm282_vm11, %v2954_v5, %v3012_v20  ;;  %v2411_v53 = vmov 1966171168  }
 0x15c   : > { %v3007_v63 = vpop.permute.xlu0 %1591  ;;  %550 = vrot.lane.b32.xlu1 %v525_v25, %s2409_s30  ;;  %751 = vrot.lane.b32.xlu0 %v3002_v19, %s2406_s27  ;;  %v3028_v31 = vpop.permute.xlu1 %1589  ;;  %v950_v25 = vadd.f32 %v943_v49, %v2672_v28 }
 0x15e   : > { %v3046_v46 = vadd.f32 %v962_v30, %v950_v25  ;;  %v505_v30 = vadd.f32 %v498_v23, %v2604_v13  ;;  %v3098_v25 = vadd.f32 %v1395_v27, %v1383_v50  ;;  %v739_v13 = vsel %vm282_vm11, %v2936_v45, %v2964_v17 }
 0x15f   : > { %v3117_v12 = vadd.f32 %v739_v13, %v727_v33  ;;  %v951_v17 = vadd.f32 %v944_v48, %v2690_v52  ;;  %v1394_v52 = vsel %vm282_vm11, %v3012_v20, %v2909_v34  ;;  %v1381_v34 = vadd.f32 %v1374_v7, %v2711_v58 }
 0x160   : > { %v3018_v51 = vpop.permute.xlu0 %1606  ;;  %753 = vrot.lane.b32.xlu1 %v3014_v0, %s2406_s27  ;;  %768 = vrot.lane.b32.xlu0 %v3014_v0, %s2409_s30  ;;  %v3042_v37 = vpop.permute.xlu1 %1593  ;;  %v3151_v6 = vadd.f32 %v1394_v52, %v1382_v59  ;;  %v1595_v58 = vsel %vm262_vm7, %v2960_v14, %v3028_v31  ;;  %v1596_v13 = vsel %vm262_vm7, %v3028_v31, %v3007_v63  ;;  %v343_v52 = vunpack.c.l.s4 %v2411_v53 }
 0x161   : > { %v3134_v41 = vadd.f32 %v963_v22, %v951_v17  ;;  %v3165_v32 = vadd.f32 %v1393_v55, %v1381_v34  ;;  %v345_v59 = vlaneseq }
 0x164   : > { %v3037_v26 = vpop.permute.xlu0 %1610  ;;  %766 = vrot.lane.b32.xlu1 %v3002_v19, %s2409_s30  ;;  %772 = vrot.lane.b32.xlu0 %v747_v10, %s2409_s30  ;;  %v3057_v28 = vpop.permute.xlu1 %1608  ;;  %v517_v10 = vsel %vm282_vm11, %v2897_v29, %v514_v43 }
 0x165   : > { %v3100_v29 = vadd.f32 %v517_v10, %v505_v30  ;;  %v1614_v20 = vsel %vm282_vm11, %v3018_v51, %v3057_v28  ;;  %v1597_v10 = vsel %vm262_vm7, %v3007_v63, %v3042_v37 }
 0x166   : > { %v1604_v30 = vadd.f32 %v1597_v10, %v2773_v1  ;;  %v1603_v1 = vadd.f32 %v1596_v13, %v2787_v24  ;;  %v3846_v10 = vld [vmem:[#allocation16_spill] sm:$0xff] }
 0x168   : > { %v3048_v39 = vpop.permute.xlu0 %1816  ;;  %975 = vrot.lane.b32.xlu1 %v3044_v47, %s2406_s27  ;;  %977 = vrot.lane.b32.xlu0 %v3046_v46, %s2406_s27  ;;  %v3076_v8 = vpop.permute.xlu1 %1612 }
 0x169   : > { %v1616_v51 = vsel %vm282_vm11, %v3037_v26, %v3076_v8 }
 0x16a   : > { %v3209_v22 = vadd.f32 %v1616_v51, %v1604_v30 }
 0x16c   : > { %v3065_v49 = vpop.permute.xlu0 %1820  ;;  %992 = vrot.lane.b32.xlu1 %v3046_v46, %s2409_s30  ;;  %990 = vrot.lane.b32.xlu0 %v3044_v47, %s2409_s30  ;;  %v3096_v57 = vpop.permute.xlu1 %1818 }
 0x16d   : > { %v1825_v24 = vsel %vm262_vm7, %v3096_v57, %v3065_v49 }
 0x170   : > { %v3088_v15 = vpop.permute.xlu0 %1835  ;;  %301 = vrot.lane.b32.xlu0 %v3078_v2, %s2406_s27  ;;  %996 = vrot.lane.b32.xlu1 %v971_v18, %s2409_s30  ;;  %v3115_v21 = vpop.permute.xlu1 %1822  ;;  %v1602_v18 = vadd.f32 %v1595_v58, %v2728_v44  ;;  %v1384_v44 = vadd.f32 %v2942_v16, %v2692_v56  ;;  %v1615_v56 = vsel %vm282_vm11, %v3057_v28, %v3037_v26 }
 0x171   : > { %v3218_v63 = vadd.f32 %v1615_v56, %v1603_v1  ;;  %v1605_v26 = vadd.f32 %v3042_v37, %v2799_v36 }
 0x172   : > { %v3191_v50 = vadd.f32 %v1614_v20, %v1602_v18  ;;  %v1403_v48 = vadd.f32 %v2946_v9, %v1384_v44  ;;  %v344_v20 = vunpack.c.0.s8 %v343_v52  ;;  %v3237_v18 = vshrl.u32 %v345_v59, 7 }
 0x173   : > { %v1624_v55 = vadd.f32 %v3076_v8, %v1605_v26  ;;  %v3849_v26 = vld [vmem:[#allocation12_spill] sm:$0xff] }
 0x174   : > { %v3106_v43 = vpop.permute.xlu0 %1839  ;;  %548 = vrot.lane.b32.xlu0 %v3100_v29, %s2409_s30  ;;  %1411 = vrot.lane.b32.xlu1 %v3098_v25, %s2406_s27  ;;  %v3132_v61 = vpop.permute.xlu1 %1837  ;;  %3845 = vst [vmem:[#allocation19_spill] sm:$0xff] %v3237_v18  ;;  %v3256_v56 = vsub.s32 %v344_v20, %v3237_v18 }
 0x175   : > { %v1844_v36 = vsel %vm282_vm11, %v3132_v61, %v3106_v43 }
 0x178   : > { %v3123_v45 = vpop.permute.xlu0 %2040  ;;  %755 = vrot.lane.b32.xlu0 %v3117_v12, %s2406_s27  ;;  %317 = vrot.lane.b32.xlu1 %v3078_v2, %s2409_s30  ;;  %v3149_v42 = vpop.permute.xlu1 %1841 }
 0x17c   : > { %v3140_v62 = vpop.permute.xlu0 %2044  ;;  %533 = vrot.lane.b32.xlu1 %v3100_v29, %s2406_s27  ;;  %994 = vrot.lane.b32.xlu0 %v3134_v41, %s2409_s30  ;;  %v3163_v23 = vpop.permute.xlu1 %2042 }
 0x180   : > { %v3157_v4 = vpop.permute.xlu0 %2059  ;;  %770 = vrot.lane.b32.xlu1 %v3117_v12, %s2409_s30  ;;  %1409 = vrot.lane.b32.xlu0 %v3151_v6, %s2406_s27  ;;  %v3176_v5 = vpop.permute.xlu1 %2046 }
 0x184   : > { %v3167_v3 = vpop.permute.xlu0 %2063  ;;  %979 = vrot.lane.b32.xlu1 %v3134_v41, %s2406_s27  ;;  %1422 = vrot.lane.b32.xlu0 %v3165_v32, %s2409_s30  ;;  %v3189_v14 = vpop.permute.xlu1 %2061 }
 0x188   : > { %v1188_v27 = vpop.permute.xlu0 %1187  ;;  %1426 = vrot.lane.b32.xlu0 %v3098_v25, %s2409_s30  ;;  %1407 = vrot.lane.b32.xlu1 %v3165_v32, %s2406_s27  ;;  %v3206_v33 = vpop.permute.xlu1 %2065 }
 0x18c   : > { %v1192_v11 = vpop.permute.xlu0 %1191  ;;  %1424 = vrot.lane.b32.xlu1 %v3151_v6, %s2409_s30  ;;  %1628 = vrot.lane.b32.xlu0 %v3191_v50, %s2406_s27  ;;  %v1190_v16 = vpop.permute.xlu1 %1189 }
 0x18d   : > { %v1193_v31 = vsel %vm303_vm9, %v1188_v27, %v1190_v16  ;;  %v1194_v9 = vsel %vm303_vm9, %v1190_v16, %v1192_v11  ;;  %v1832_v27 = vadd.f32 %v1825_v24, %v2821_v54  ;;  %v1200_v8 = vadd.f32 %v1192_v11, %v2883_v60 }
 0x18e   : > { %v1198_v28 = vadd.f32 %v1193_v31, %v2869_v35  ;;  %v1824_v35 = vsel %vm262_vm7, %v3048_v39, %v3096_v57  ;;  %v1199_v51 = vadd.f32 %v1194_v9, %v3846_v10  ;;  %v3847_v57 = vld [vmem:[#allocation9_spill] sm:$0xff]  ;;  %v1826_v11 = vsel %vm262_vm7, %v3065_v49, %v3115_v21  ;;  %v3848_v9 = vld [vmem:[#allocation10_spill] sm:$0xff] }
 0x18f   : > { %v3248_v30 = vadd.f32 %v1844_v36, %v1832_v27  ;;  %v1831_v60 = vadd.f32 %v1824_v35, %v3847_v57  ;;  %v1833_v53 = vadd.f32 %v1826_v11, %v3848_v9  ;;  %v2048_v49 = vsel %vm262_vm7, %v3123_v45, %v3163_v23  ;;  %v3852_v27 = vld [vmem:[#allocation14_spill] sm:$0xff] }
 0x190   : > { %1428 = vrot.lane.b32.xlu1 %v1403_v48, %s2409_s30  ;;  %1632 = vrot.lane.b32.xlu0 %v3209_v22, %s2406_s27  ;;  %v1205_v17 = vpop.permute.xlu0 %1204  ;;  %v1203_v7 = vpop.permute.xlu1 %1202  ;;  %v1843_v48 = vsel %vm282_vm11, %v3088_v15, %v3132_v61  ;;  %v1845_v15 = vsel %vm282_vm11, %v3106_v43, %v3149_v42  ;;  %v2067_v43 = vsel %vm282_vm11, %v3157_v4, %v3189_v14 }
 0x191   : > { %v1210_v34 = vsel %vm321_vm12, %v1203_v7, %v1205_v17  ;;  %v3283_v59 = vadd.f32 %v1845_v15, %v1833_v53  ;;  %v2055_v24 = vadd.f32 %v2048_v49, %v3849_v26  ;;  %v2050_v45 = vsel %vm262_vm7, %v3140_v62, %v3176_v5 }
 0x192   : > { %v1216_v37 = vadd.f32 %v1210_v34, %v1198_v28  ;;  %v2069_v7 = vsel %vm282_vm11, %v3167_v3, %v3206_v33  ;;  %v3851_v34 = vld [vmem:[#allocation13_spill] sm:$0xff] }
 0x193   : > { %v3296_v28 = vadd.f32 %v2067_v43, %v2055_v24  ;;  %v2057_v36 = vadd.f32 %v2050_v45, %v3851_v34  ;;  %v3853_v45 = vld [vmem:[#allocation17_spill] sm:$0xff] }
 0x194   : > { %1630 = vrot.lane.b32.xlu1 %v3218_v63, %s2406_s27  ;;  %1645 = vrot.lane.b32.xlu0 %v3218_v63, %s2409_s30  ;;  %v1209_v58 = vpop.permute.xlu0 %1208  ;;  %v1207_v44 = vpop.permute.xlu1 %1206 }
 0x195   : > { %v1211_v13 = vsel %vm321_vm12, %v1205_v17, %v1207_v44  ;;  %v1212_v54 = vsel %vm321_vm12, %v1207_v44, %v1209_v58  ;;  %v3266_v17 = vadd.f32 %v1843_v48, %v1831_v60  ;;  %v3312_v20 = vadd.f32 %v2069_v7, %v2057_v36 }
 0x196   : > { %v1217_v1 = vadd.f32 %v1211_v13, %v1199_v51  ;;  %v1218_v39 = vadd.f32 %v1212_v54, %v1200_v8 }
 0x198   : > { %1643 = vrot.lane.b32.xlu1 %v3191_v50, %s2409_s30  ;;  %1649 = vrot.lane.b32.xlu0 %v1624_v55, %s2409_s30  ;;  %v1224_v16 = vcombine.low %v1216_v37, %v1217_v1  ;;  %v1238_v31 = vrot.slane %v1218_v39, %v3256_v56  ;;  %v3850_v55 = vld [vmem:[#allocation11_spill] sm:$0xff]  ;;  %v2049_v37 = vsel %vm262_vm7, %v3163_v23, %v3140_v62  ;;  %v298_v62 = vpop.permute.xlu0 %297 }
 0x199   : > { %v1834_v4 = vadd.f32 %v3115_v21, %v3850_v55  ;;  %v2068_v21 = vsel %vm282_vm11, %v3189_v14, %v3167_v3  ;;  %v2056_v35 = vadd.f32 %v2049_v37, %v3852_v27 }
 0x19a   : > { %v1231_v61 = vrot.slane %v1224_v16, %v3256_v56 }
 0x19b   : > { %v1853_v58 = vadd.f32 %v3149_v42, %v1834_v4  ;;  %v3321_v8 = vadd.f32 %v2068_v21, %v2056_v35  ;;  %v3854_v4 = vld [vmem:[#allocation18_spill] sm:$0xff] }
 0x19c   : > { %1647 = vrot.lane.b32.xlu1 %v3209_v22, %s2409_s30  ;;  %1859 = vrot.lane.b32.xlu0 %v3248_v30, %s2406_s27  ;;  %v3281_v52 = vcombine.low %v1231_v61, %v1238_v31 }
 0x1a0   : > { %1872 = vrot.lane.b32.xlu0 %v3266_v17, %s2409_s30  ;;  %1857 = vrot.lane.b32.xlu1 %v3266_v17, %s2406_s27 }
 0x1a2   : > { %v300_v42 = vpop.permute.xlu1 %299  ;;  %v316_v23 = vpop.permute.xlu0 %315 }
 0x1a3   : > { %v304_v43 = vsel %vm303_vm9, %v298_v62, %v300_v42 }
 0x1a4   : > { %1876 = vrot.lane.b32.xlu0 %v3283_v59, %s2409_s30  ;;  %1861 = vrot.lane.b32.xlu1 %v3283_v59, %s2406_s27  ;;  %v309_v7 = vadd.f32 %v304_v43, %v3853_v45 }
 0x1a6   : > { %v314_v3 = vpop.permute.xlu1 %313 }
 0x1a7   : > { %v322_v24 = vsel %vm321_vm12, %v314_v3, %v316_v23 }
 0x1a8   : > { %1874 = vrot.lane.b32.xlu1 %v3248_v30, %s2409_s30  ;;  %2081 = vrot.lane.b32.xlu0 %v3296_v28, %s2406_s27  ;;  %v328_v35 = vadd.f32 %v322_v24, %v309_v7 }
 0x1ac   : > { %1878 = vrot.lane.b32.xlu1 %v1853_v58, %s2409_s30  ;;  %2085 = vrot.lane.b32.xlu0 %v3312_v20, %s2406_s27 }
 0x1b0   : > { %2083 = vrot.lane.b32.xlu1 %v3321_v8, %s2406_s27  ;;  %2098 = vrot.lane.b32.xlu0 %v3321_v8, %s2409_s30 }
 0x1b4   : > { %2096 = vrot.lane.b32.xlu1 %v3296_v28, %s2409_s30 }
 0x1b5   : > { %v320_v14 = vpop.permute.xlu0 %319 }
 0x1c6   : > { %v532_v10 = vpop.permute.xlu0 %531  ;;  %v530_v51 = vpop.permute.xlu1 %529 }
 0x1c7   : > { %v535_v55 = vsel %vm303_vm9, %v530_v51, %v532_v10 }
 0x1c8   : > { %v540_v3 = vadd.f32 %v535_v55, %v2978_v40 }
 0x1ca   : > { %v545_v44 = vpop.permute.xlu0 %544  ;;  %v547_v13 = vpop.permute.xlu1 %546 }
 0x1cb   : > { %v552_v62 = vsel %vm321_vm12, %v545_v44, %v547_v13 }
 0x1ce   : > { %v752_v54 = vpop.permute.xlu0 %751  ;;  %v551_v48 = vpop.permute.xlu1 %550 }
 0x1d2   : > { %v769_v1 = vpop.permute.xlu0 %768  ;;  %v754_v39 = vpop.permute.xlu1 %753 }
 0x1d3   : > { %v757_v43 = vsel %vm303_vm9, %v752_v54, %v754_v39 }
 0x1d4   : > { %v762_v54 = vadd.f32 %v757_v43, %v3002_v19 }
 0x1d6   : > { %v773_v57 = vpop.permute.xlu0 %772  ;;  %v767_v60 = vpop.permute.xlu1 %766 }
 0x1da   : > { %v3329_v11 = vpop.permute.xlu0 %977  ;;  %v976_v16 = vpop.permute.xlu1 %975 }
 0x1db   : > { %v981_v19 = vsel %vm303_vm9, %v976_v16, %v3329_v11 }
 0x1de   : > { %v991_v15 = vpop.permute.xlu0 %990  ;;  %v3331_v61 = vpop.permute.xlu1 %992 }
 0x1e2   : > { %v302_v31 = vpop.permute.xlu0 %301  ;;  %v3333_v9 = vpop.permute.xlu1 %996 }
 0x1e3   : > { %v305_v26 = vsel %vm303_vm9, %v300_v42, %v302_v31  ;;  %v311_v36 = vadd.f32 %v302_v31, %v3078_v2 }
 0x1e4   : > { %v310_v34 = vadd.f32 %v305_v26, %v3854_v4  ;;  %v558_v4 = vadd.f32 %v552_v62, %v540_v3 }
 0x1e6   : > { %v549_v53 = vpop.permute.xlu0 %548  ;;  %v3335_v49 = vpop.permute.xlu1 %1411 }
 0x1e7   : > { %v553_v7 = vsel %vm321_vm12, %v547_v13, %v549_v53  ;;  %v554_v55 = vsel %vm321_vm12, %v549_v53, %v551_v48 }
 0x1ea   : > { %v756_v37 = vpop.permute.xlu0 %755  ;;  %v318_v58 = vpop.permute.xlu1 %317 }
 0x1eb   : > { %v323_v21 = vsel %vm321_vm12, %v316_v23, %v318_v58  ;;  %v324_v27 = vsel %vm321_vm12, %v318_v58, %v320_v14  ;;  %v758_v2 = vsel %vm303_vm9, %v754_v39, %v756_v37  ;;  %v774_v14 = vsel %vm321_vm12, %v767_v60, %v769_v1 }
 0x1ec   : > { %v329_v42 = vadd.f32 %v323_v21, %v310_v34  ;;  %v330_v18 = vadd.f32 %v324_v27, %v311_v36  ;;  %v764_v39 = vadd.f32 %v756_v37, %v3117_v12  ;;  %v780_v21 = vadd.f32 %v774_v14, %v762_v54 }
 0x1ee   : > { %v341_v51 = vcombine.low %v328_v35, %v329_v42  ;;  %v995_v45 = vpop.permute.xlu0 %994  ;;  %v534_v26 = vpop.permute.xlu1 %533  ;;  %v355_v24 = vrot.slane %v330_v18, %v3256_v56 }
 0x1ef   : > { %v536_v31 = vsel %vm303_vm9, %v532_v10, %v534_v26  ;;  %v542_v23 = vadd.f32 %v534_v26, %v3100_v29  ;;  %v763_v10 = vadd.f32 %v758_v2, %v3014_v0  ;;  %v998_v0 = vsel %vm321_vm12, %v991_v15, %v3331_v61 }
 0x1f0   : > { %v348_v44 = vrot.slane %v341_v51, %v3256_v56  ;;  %v541_v40 = vadd.f32 %v536_v31, %v2980_v38 }
 0x1f1   : > { %v560_v36 = vadd.f32 %v554_v55, %v542_v23 }
 0x1f2   : > { %v356_v34 = vcombine.low %v348_v44, %v355_v24  ;;  %v559_v29 = vadd.f32 %v553_v7, %v541_v40  ;;  %v1410_v60 = vpop.permute.xlu0 %1409  ;;  %v771_v58 = vpop.permute.xlu1 %770  ;;  %v3855_v44 = vld [vmem:[#allocation15_spill] sm:$0xff] }
 0x1f3   : > { %v775_v18 = vsel %vm321_vm12, %v769_v1, %v771_v58  ;;  %v776_v38 = vsel %vm321_vm12, %v771_v58, %v773_v57  ;;  %v582_v37 = vrot.slane %v560_v36, %v3256_v56  ;;  %v986_v57 = vadd.f32 %v981_v19, %v3044_v47 }
 0x1f4   : > { %v568_v13 = vcombine.low %v558_v4, %v559_v29  ;;  %v781_v27 = vadd.f32 %v775_v18, %v763_v10  ;;  %v782_v48 = vadd.f32 %v776_v38, %v764_v39  ;;  %v363_v12 = vrot.slane %v356_v34, %v3256_v56 }
 0x1f5   : > { %v1004_v26 = vadd.f32 %v998_v0, %v986_v57  ;;  %v999_v4 = vsel %vm321_vm12, %v3331_v61, %v995_v45  ;;  %v1000_v47 = vsel %vm321_vm12, %v995_v45, %v3333_v9  ;;  %v2058_v24 = vadd.f32 %v3176_v5, %v3855_v44 }
 0x1f6   : > { %v575_v53 = vrot.slane %v568_v13, %v3256_v56  ;;  %v790_v35 = vcombine.low %v780_v21, %v781_v27  ;;  %v1423_v62 = vpop.permute.xlu0 %1422  ;;  %v980_v1 = vpop.permute.xlu1 %979  ;;  %364 = vrot.lane.b32.xlu1 %v363_v12, %s2407_s28  ;;  %v804_v15 = vrot.slane %v782_v48, %v3256_v56 }
 0x1f7   : > { %v982_v16 = vsel %vm303_vm9, %v3329_v11, %v980_v1  ;;  %v988_v42 = vadd.f32 %v980_v1, %v3134_v41  ;;  %v2077_v45 = vadd.f32 %v3206_v33, %v2058_v24  ;;  %v1420_v33 = vadd.f32 %v3335_v49, %v3098_v25 }
 0x1f8   : > { %v583_v3 = vcombine.low %v575_v53, %v582_v37  ;;  %v797_v43 = vrot.slane %v790_v35, %v3256_v56  ;;  %v987_v51 = vadd.f32 %v982_v16, %v3046_v46  ;;  %v1414_v46 = vsel %vm303_vm9, %v1410_v60, %v3335_v49 }
 0x1f9   : > { %v1006_v23 = vadd.f32 %v1000_v47, %v988_v42  ;;  %v1419_v54 = vadd.f32 %v1414_v46, %v3151_v6  ;;  %v1246_v6 = vrot.slane %v3281_v52, %v3256_v56  ;;  %v3422_v47 = vld [vmem:[%s2471_s25] sm:$0xff] }
 0x1fa   : > { %v805_v2 = vcombine.low %v797_v43, %v804_v15  ;;  %v1005_v31 = vadd.f32 %v999_v4, %v987_v51  ;;  %v1427_v11 = vpop.permute.xlu0 %1426  ;;  %v1408_v14 = vpop.permute.xlu1 %1407  ;;  %v590_v41 = vrot.slane %v583_v3, %v3256_v56  ;;  %2100 = vrot.lane.b32.xlu1 %v3312_v20, %s2409_s30 }
 0x1fb   : > { %v1413_v61 = vsel %vm303_vm9, %v1408_v14, %v1410_v60  ;;  %v1029_v5 = vrot.slane %v1006_v23, %v3256_v56 }
 0x1fc   : > { %v1015_v40 = vcombine.low %v1004_v26, %v1005_v31  ;;  %591 = vrot.lane.b32.xlu0 %v590_v41, %s2407_s28  ;;  %v812_v9 = vrot.slane %v805_v2, %v3256_v56  ;;  %v1418_v55 = vadd.f32 %v1413_v61, %v3165_v32 }
 0x1fe   : > { %v1022_v7 = vrot.slane %v1015_v40, %v3256_v56  ;;  %v1629_v39 = vpop.permute.xlu0 %1628  ;;  %v1425_v10 = vpop.permute.xlu1 %1424  ;;  %813 = vrot.lane.b32.xlu1 %v812_v9, %s2407_s28 }
 0x1ff   : > { %v1430_v34 = vsel %vm321_vm12, %v1423_v62, %v1425_v10  ;;  %v1431_v29 = vsel %vm321_vm12, %v1425_v10, %v1427_v11 }
 0x200   : > { %v1030_v36 = vcombine.low %v1022_v7, %v1029_v5  ;;  %v1436_v60 = vadd.f32 %v1430_v34, %v1418_v55  ;;  %v1437_v58 = vadd.f32 %v1431_v29, %v1419_v54  ;;  %2102 = vrot.lane.b32.xlu0 %v2077_v45, %s2409_s30 }
 0x202   : > { %v1444_v32 = vcombine.low %v1436_v60, %v1437_v58  ;;  %v1633_v21 = vpop.permute.xlu0 %1632  ;;  %v1429_v18 = vpop.permute.xlu1 %1428  ;;  %v1037_v38 = vrot.slane %v1030_v36, %v3256_v56  ;;  %1247 = vrot.lane.b32.xlu1 %v1246_v6, %s2407_s28  ;;  %v3445_v58 = vld [vmem:[%s2471_s25 + $0x8] sm:$0xf] }
 0x203   : > { %v1432_v19 = vsel %vm321_vm12, %v1427_v11, %v1429_v18  ;;  %v1641_v1 = vadd.f32 %v1633_v21, %v3209_v22 }
 0x204   : > { %v1438_v13 = vadd.f32 %v1432_v19, %v1420_v33  ;;  %1038 = vrot.lane.b32.xlu0 %v1037_v38, %s2407_s28  ;;  %v1451_v27 = vrot.slane %v1444_v32, %v3256_v56  ;;  %v3475_v33 = vld [vmem:[%s3806_s0] ss:$2 sm:$0x7]  ;;  %v3863_v38 = vld [vmem:[#allocation19_spill] sm:$0xff] }
 0x205   : > { %vm331_vm13 = vcmp.ge.s32.totalorder %v3475_v33, 1  ;;  %vm332_vm14 = vcmp.le.s32.totalorder %v3475_v33, 16 }
 0x206   : > { %v1458_v48 = vrot.slane %v1438_v13, %v3256_v56  ;;  %v1646_v52 = vpop.permute.xlu0 %1645  ;;  %v1631_v12 = vpop.permute.xlu1 %1630  ;;  %vm3484_vm15 = vmand %vm331_vm13, %vm332_vm14  ;;  %vm1007_vm13 = vcmp.ge.s32.totalorder %v3475_v33, 0  ;;  %vm1008_vm14 = vcmp.le.s32.totalorder %v3475_v33, 15 }
 0x207   : > { %v1634_v37 = vsel %vm303_vm9, %v1629_v39, %v1631_v12  ;;  %v1635_v35 = vsel %vm303_vm9, %v1631_v12, %v1633_v21  ;;  %v3856_v39 = vld [vmem:[#allocation2_spill] sm:$0xff] }
 0x208   : > { %v1459_v0 = vcombine.low %v1451_v27, %v1458_v48  ;;  %v1639_v57 = vadd.f32 %v1634_v37, %v3191_v50  ;;  %v1640_v16 = vadd.f32 %v1635_v35, %v3218_v63  ;;  %v3480_v21 = vld [vmem:[%s3806_s0 + $0x1] ss:$2 sm:$0x7] }
 0x209   : > { %vm334_vm0 = vcmp.ge.s32.totalorder %v3480_v21, 1  ;;  %vm336_vm2 = vcmp.le.s32.totalorder %v3480_v21, 16  ;;  %vm561_vm3 = vcmp.ge.s32.totalorder %v3480_v21, 0  ;;  %vm563_vm7 = vcmp.le.s32.totalorder %v3480_v21, 15 }
 0x20a   : > { %v1650_v25 = vpop.permute.xlu0 %1649  ;;  %v1644_v49 = vpop.permute.xlu1 %1643  ;;  %v1466_v53 = vrot.slane %v1459_v0, %v3256_v56  ;;  %vm335_vm1 = vmand %vm3484_vm15, %vm334_vm0  ;;  %vm783_vm8 = vcmp.ge.s32.totalorder %v3480_v21, 4294967295  ;;  %vm785_vm11 = vcmp.le.s32.totalorder %v3480_v21, 14 }
 0x20b   : > { %v1651_v62 = vsel %vm321_vm12, %v1644_v49, %v1646_v52  ;;  %vm337_vm4 = vmand %vm335_vm1, %vm336_vm2 }
 0x20c   : > { %1467 = vrot.lane.b32.xlu0 %v1466_v53, %s2407_s28  ;;  %v1657_v51 = vadd.f32 %v1651_v62, %v1639_v57  ;;  %vm562_vm6 = vmand %vm3484_vm15, %vm561_vm3 }
 0x20d   : > { %vm784_vm10 = vmand %vm3484_vm15, %vm783_vm8 }
 0x20e   : > { %v1860_v42 = vpop.permute.xlu0 %1859  ;;  %v1648_v3 = vpop.permute.xlu1 %1647  ;;  %vm786_vm15 = vmand %vm784_vm10, %vm785_vm11 }
 0x20f   : > { %v1652_v43 = vsel %vm321_vm12, %v1646_v52, %v1648_v3  ;;  %v1653_v15 = vsel %vm321_vm12, %v1648_v3, %v1650_v25  ;;  %vm3532_vm1 = vmand %vm1007_vm13, %vm1008_vm14 }
 0x210   : > { %v1658_v26 = vadd.f32 %v1652_v43, %v1640_v16  ;;  %v1659_v4 = vadd.f32 %v1653_v15, %v1641_v1  ;;  %863 = vrot.lane.b32.xlu0 %v3422_v47, %s2412_s5  ;;  %vm1439_vm13 = vmand %vm3532_vm1, %vm783_vm8 }
 0x211   : > { %vm1440_vm14 = vmand %vm1439_vm13, %vm785_vm11  ;;  %vm1975_vm13 = vcmask 392192  }
 0x212   : > { %v1668_v22 = vcombine.low %v1657_v51, %v1658_v26  ;;  %v1858_v2 = vpop.permute.xlu1 %1857  ;;  %v1682_v63 = vrot.slane %v1659_v4, %v3256_v56  ;;  %v1873_v31 = vpop.permute.xlu0 %1872 }
 0x213   : > { %v1863_v14 = vsel %vm303_vm9, %v1858_v2, %v1860_v42 }
 0x214   : > { %v1675_v50 = vrot.slane %v1668_v22, %v3256_v56  ;;  %v1868_v24 = vadd.f32 %v1863_v14, %v3266_v17 }
 0x216   : > { %v1683_v23 = vcombine.low %v1675_v50, %v1682_v63  ;;  %v1862_v11 = vpop.permute.xlu1 %1861  ;;  %v1877_v46 = vpop.permute.xlu0 %1876 }
 0x217   : > { %v1864_v41 = vsel %vm303_vm9, %v1860_v42, %v1862_v11  ;;  %v1870_v5 = vadd.f32 %v1862_v11, %v3283_v59  ;;  %v3460_v59 = vld [vmem:[%s2471_s25 + $0x8] sm:$0xff] }
 0x218   : > { %v1690_v44 = vrot.slane %v1683_v23, %v3256_v56  ;;  %v1869_v61 = vadd.f32 %v1864_v41, %v3248_v30 }
 0x21a   : > { %1691 = vrot.lane.b32.xlu1 %v1690_v44, %s2407_s28  ;;  %v1875_v40 = vpop.permute.xlu1 %1874  ;;  %v2082_v6 = vpop.permute.xlu0 %2081 }
 0x21b   : > { %v1880_v9 = vsel %vm321_vm12, %v1873_v31, %v1875_v40  ;;  %v1881_v45 = vsel %vm321_vm12, %v1875_v40, %v1877_v46 }
 0x21c   : > { %v1886_v54 = vadd.f32 %v1880_v9, %v1868_v24  ;;  %v1887_v7 = vadd.f32 %v1881_v45, %v1869_v61 }
 0x21e   : > { %v1894_v55 = vcombine.low %v1886_v54, %v1887_v7  ;;  %865 = vrot.lane.b32.xlu1 %v3856_v39, %s2412_s5  ;;  %v1879_v17 = vpop.permute.xlu1 %1878  ;;  %v2086_v18 = vpop.permute.xlu0 %2085 }
 0x21f   : > { %v1882_v10 = vsel %vm321_vm12, %v1877_v46, %v1879_v17  ;;  %v2094_v51 = vadd.f32 %v2086_v18, %v3312_v20 }
 0x220   : > { %v1888_v30 = vadd.f32 %v1882_v10, %v1870_v5  ;;  %v1901_v34 = vrot.slane %v1894_v55, %v3256_v56 }
 0x222   : > { %v1908_v29 = vrot.slane %v1888_v30, %v3256_v56  ;;  %v2084_v32 = vpop.permute.xlu1 %2083  ;;  %v2099_v27 = vpop.permute.xlu0 %2098 }
 0x223   : > { %v2088_v48 = vsel %vm303_vm9, %v2084_v32, %v2086_v18  ;;  %v2087_v12 = vsel %vm303_vm9, %v2082_v6, %v2084_v32  ;;  %vm3512_vm9 = vmand %vm562_vm6, %vm563_vm7 }
 0x224   : > { %v1909_v36 = vcombine.low %v1901_v34, %v1908_v29  ;;  %v2093_v25 = vadd.f32 %v2088_v48, %v3321_v8  ;;  %v2092_v35 = vadd.f32 %v2087_v12, %v3296_v28  ;;  %vm1219_vm6 = vmand %vm3532_vm1, %vm561_vm3  ;;  %v3865_v12 = vld [vmem:[#allocation3_spill] sm:$0xff] }
 0x225   : > { %vm1220_vm10 = vmand %vm1219_vm6, %vm563_vm7  ;;  %vm869_vm6 = vcmask 711680  }
 0x226   : > { %v1916_v60 = vrot.slane %v1909_v36, %v3256_v56  ;;  %v2097_v19 = vpop.permute.xlu1 %2096 }
 0x227   : > { %v2104_v49 = vsel %vm321_vm12, %v2097_v19, %v2099_v27  ;;  %v3555_v19 = vsub.s32 0, %v3863_v38 }
 0x228   : > { %1917 = vrot.lane.b32.xlu0 %v1916_v60, %s2407_s28  ;;  %v2110_v28 = vadd.f32 %v2104_v49, %v2092_v35  ;;  %v3867_v35 = vld [vmem:[#allocation7_spill] sm:$0xff] }
 0x22c   : > { %867 = vrot.lane.b32.xlu0 %v3445_v58, %s2412_s5 }
 0x230   : > { %1090 = vrot.lane.b32.xlu0 %v3856_v39, %s2413_s6 }
 0x234   : > { %1297 = vrot.lane.b32.xlu0 %v3422_v47, %s2414_s7 }
 0x238   : > { %1301 = vrot.lane.b32.xlu0 %v3445_v58, %s2414_s7 }
 0x23c   : > { %1519 = vrot.lane.b32.xlu0 %v3856_v39, %s2415_s8 }
 0x240   : > { %1744 = vrot.lane.b32.xlu0 %v3422_v47, %s2416_s9 }
 0x244   : > { %1748 = vrot.lane.b32.xlu0 %v3460_v59, %s2416_s9 }
 0x248   : > { %1967 = vrot.lane.b32.xlu0 %v3422_v47, %s2417_s10 }
 0x24c   : > { %1971 = vrot.lane.b32.xlu0 %v3460_v59, %s2417_s10 }
 0x250   : > { %2191 = vrot.lane.b32.xlu0 %v3422_v47, %s2418_s11 }
 0x254   : > { %2195 = vrot.lane.b32.xlu0 %v3460_v59, %s2418_s11 }
 0x268   : > { %v365_v13 = vpop.permute.xlu1 %364 }
 0x269   : > { %v366_v52 = vrot.slane %v365_v13, 1 }
 0x26b   : > { %v368_v0 = vsel %vm367_vm5, %v365_v13, %v366_v52  ;;  %v3558_v13 = vsub.s32 1, %v3863_v38  ;;  %v3864_v52 = vld [vmem:[#allocation4_spill] sm:$0xff] }
 0x26c   : > { %v370_v53 = vsel %vm337_vm4, %v368_v0, 0.0  ;;  %v2101_v37 = vpop.permute.xlu1 %2100  ;;  %vm1010_vm4 = vmand %vm3532_vm1, %vm334_vm0  ;;  %vm1661_vm1 = vcmp.le.s32.totalorder %v3475_v33, 14 }
 0x26d   : > { %v371_v62 = vsub.f32 -inf, %v370_v53  ;;  %v374_v1 = vsub.f32 %v370_v53, %v370_v53  ;;  %v2105_v57 = vsel %vm321_vm12, %v2099_v27, %v2101_v37 }
 0x26e   : > { %v592_v42 = vpop.permute.xlu0 %591  ;;  %v2111_v3 = vadd.f32 %v2105_v57, %v2093_v25  ;;  %v3577_v57 = vsub.s32 2, %v3863_v38 }
 0x26f   : > { %v593_v43 = vrot.slane %v592_v42, 1  ;;  %v372_v8 = vmul.f32 1.442695, %v371_v62  ;;  %v375_v15 = vmul.f32 1.442695, %v374_v1  ;;  %v3868_v62 = vld [vmem:[#allocation6_spill] sm:$0xff] }
 0x270   : > { %v814_v4 = vpop.permute.xlu1 %813  ;;  %v2118_v22 = vcombine.low %v2110_v28, %v2111_v3  ;;  %v647_v1 = vsel %vm321_vm12, %v3868_v62, %v3867_v35 }
 0x271   : > { %v594_v26 = vsel %vm367_vm5, %v592_v42, %v593_v43  ;;  %2352 = vpow2.f32 %v372_v8  ;;  %v815_v50 = vrot.slane %v814_v4, 1 }
 0x272   : > { %v596_v2 = vsel %vm3512_vm9, %v594_v26, 0.0  ;;  %v2103_v63 = vpop.permute.xlu0 %2102  ;;  %2354 = vpow2.f32 %v375_v15  ;;  %v2125_v61 = vrot.slane %v2118_v22, %v3256_v56  ;;  %vm1011_vm9 = vmand %vm1010_vm4, %vm336_vm2 }
 0x273   : > { %v597_v31 = vmax.f32 %v370_v53, %v596_v2  ;;  %v2106_v23 = vsel %vm321_vm12, %v2101_v37, %v2103_v63  ;;  %v816_v11 = vsel %vm367_vm5, %v814_v4, %v815_v50 }
 0x274   : > { %v2112_v14 = vadd.f32 %v2106_v23, %v2094_v51  ;;  %v818_v24 = vsel %vm786_vm15, %v816_v11, 0.0  ;;  %v1248_v46 = vpop.permute.xlu1 %1247  ;;  %vm1660_vm15 = vcmp.ge.s32.totalorder %v3475_v33, 4294967295 }
 0x275   : > { %v598_v41 = vsub.f32 %v370_v53, %v597_v31  ;;  %v601_v44 = vsub.f32 %v596_v2, %v597_v31  ;;  %v819_v40 = vmax.f32 %v597_v31, %v818_v24  ;;  %v1249_v45 = vrot.slane %v1248_v46, 1  ;;  %v3866_v53 = vld [vmem:[#allocation5_spill] sm:$0xff]  ;;  %vm3605_vm4 = vmand %vm1660_vm15, %vm1661_vm1 }
 0x276   : > { %v2132_v9 = vrot.slane %v2112_v14, %v3256_v56  ;;  %v1039_v54 = vpop.permute.xlu0 %1038  ;;  %v426_v37 = vsel %vm367_vm5, %v3864_v52, %v3866_v53  ;;  %vm2238_vm15 = vcmask 519168  }
 0x277   : > { %v599_v7 = vmul.f32 1.442695, %v598_v41  ;;  %v602_v5 = vmul.f32 1.442695, %v601_v44  ;;  %v1040_v55 = vrot.slane %v1039_v54, 1  ;;  %v820_v17 = vsub.f32 %v597_v31, %v819_v40 }
 0x278   : > { %v823_v10 = vsub.f32 %v818_v24, %v819_v40  ;;  %v2133_v30 = vcombine.low %v2125_v61, %v2132_v9  ;;  %v1250_v36 = vsel %vm367_vm5, %v1248_v46, %v1249_v45 }
 0x279   : > { %2356 = vpow2.f32 %v599_v7  ;;  %v1041_v34 = vsel %vm367_vm5, %v1039_v54, %v1040_v55  ;;  %v821_v29 = vmul.f32 1.442695, %v820_v17  ;;  %v1252_v27 = vsel %vm1220_vm10, %v1250_v36, 0.0 }
 0x27a   : > { %2358 = vpow2.f32 %v602_v5  ;;  %v1043_v60 = vsel %vm1011_vm9, %v1041_v34, 0.0  ;;  %v824_v6 = vmul.f32 1.442695, %v823_v10  ;;  %v2140_v18 = vrot.slane %v2133_v30, %v3256_v56  ;;  %v3871_v30 = vld [vmem:[#allocation8_spill] sm:$0xff] }
 0x27b   : > { %v1044_v32 = vmax.f32 %v819_v40, %v1043_v60  ;;  %2360 = vpow2.f32 %v821_v29  ;;  %v425_v56 = vsel %vm367_vm5, %v3865_v12, %v3864_v52  ;;  %v648_v34 = vsel %vm321_vm12, %v3867_v35, %v3871_v30  ;;  %vm3624_vm12 = vmand %vm3605_vm4, %vm334_vm0 }
 0x27c   : > { %2141 = vrot.lane.b32.xlu1 %v2140_v18, %s2407_s28  ;;  %2362 = vpow2.f32 %v824_v6  ;;  %vm1664_vm0 = vmand %vm3624_vm12, %vm336_vm2  ;;  %vm1094_vm10 = vcmask 564224  }
 0x27d   : > { %v1045_v48 = vsub.f32 %v819_v40, %v1044_v32  ;;  %v3568_v0 = vmax.f32 %v1044_v32, %v1252_v27  ;;  %v1048_v15 = vsub.f32 %v1043_v60, %v1044_v32  ;;  %vm1889_vm2 = vmand %vm3605_vm4, %vm561_vm3 }
 0x27e   : > { %v1468_v25 = vpop.permute.xlu0 %1467  ;;  %v2353_v49 = vpop.eup %2352  ;;  %vm1890_vm9 = vmand %vm1889_vm2, %vm563_vm7 }
 0x27f   : > { %v2355_v16 = vpop.eup %2354  ;;  %v1046_v42 = vmul.f32 1.442695, %v1045_v48  ;;  %v1469_v3 = vrot.slane %v1468_v25, 1  ;;  %v385_v43 = vrot.slane %v2353_v49, %v3555_v19  ;;  %v389_v28 = vrot.slane %v2353_v49, %v3558_v13  ;;  %vm2113_vm3 = vmand %vm3605_vm4, %vm783_vm8 }
 0x280   : > { %v377_v8 = vmul.f32 0.0, %v2353_v49  ;;  %1088 = vrot.lane.b32.xlu1 %v3422_v47, %s2413_s6  ;;  %v404_v51 = vrot.slane %v2355_v16, %v3555_v19  ;;  %v1254_v26 = vsub.f32 %v1044_v32, %v3568_v0  ;;  %v1257_v2 = vsub.f32 %v1252_v27, %v3568_v0  ;;  %vm2114_vm7 = vmand %vm2113_vm3, %vm785_vm11 }
 0x281   : > { %v1470_v4 = vsel %vm367_vm5, %v1468_v25, %v1469_v3  ;;  %v397_v22 = vmul.f32 0.0, %v385_v43  ;;  %v393_v31 = vrot.slane %v2353_v49, %v3577_v57  ;;  %2364 = vpow2.f32 %v1046_v42 }
 0x282   : > { %v1472_v50 = vsel %vm1440_vm14, %v1470_v4, 0.0  ;;  %v430_v63 = vmul.f32 %v425_v56, %v404_v51  ;;  %v398_v20 = vmul.f32 0.0, %v389_v28  ;;  %v408_v11 = vrot.slane %v2355_v16, %v3558_v13  ;;  %v864_v43 = vpop.permute.xlu0 %863 }
 0x283   : > { %v3593_v23 = vmax.f32 %v3568_v0, %v1472_v50  ;;  %v378_v14 = vadd.f32 %v2355_v16, %v377_v8  ;;  %v1049_v41 = vmul.f32 1.442695, %v1048_v15  ;;  %v399_v44 = vmul.f32 0.0, %v393_v31 }
 0x284   : > { %1092 = vrot.lane.b32.xlu1 %v3445_v58, %s2413_s6  ;;  %v412_v24 = vrot.slane %v2355_v16, %v3577_v57  ;;  %v1255_v61 = vmul.f32 1.442695, %v1254_v26  ;;  %v433_v9 = vadd.f32 %v430_v63, %v397_v22  ;;  %v431_v45 = vmul.f32 %v426_v37, %v408_v11 }
 0x285   : > { %v1474_v40 = vsub.f32 %v3568_v0, %v3593_v23  ;;  %v1258_v29 = vmul.f32 1.442695, %v1257_v2  ;;  %2366 = vpow2.f32 %v1049_v41  ;;  %v1477_v27 = vsub.f32 %v1472_v50, %v3593_v23 }
 0x286   : > { %v2357_v46 = vpop.eup %2356  ;;  %v432_v17 = vmul.f32 %v3866_v53, %v412_v24  ;;  %v434_v60 = vadd.f32 %v431_v45, %v398_v20  ;;  %2368 = vpow2.f32 %v1255_v61  ;;  %v1743_v45 = vcombine.high %v3460_v59, %v3460_v59 }
 0x287   : > { %v2359_v54 = vpop.eup %2358  ;;  %v604_v7 = vmul.f32 %v2357_v46, %v378_v14  ;;  %v610_v55 = vrot.slane %v2357_v46, %v3555_v19  ;;  %v614_v10 = vrot.slane %v2357_v46, %v3558_v13  ;;  %v618_v38 = vrot.slane %v2357_v46, %v3577_v57 }
 0x288   : > { %v629_v36 = vrot.slane %v2359_v54, %v3555_v19  ;;  %v2361_v6 = vpop.eup %2360  ;;  %1299 = vrot.lane.b32.xlu1 %v3856_v39, %s2414_s7  ;;  %v435_v18 = vadd.f32 %v432_v17, %v399_v44  ;;  %v1475_v0 = vmul.f32 1.442695, %v1474_v40  ;;  %v633_v62 = vrot.slane %v2359_v54, %v3558_v13 }
 0x289   : > { %v605_v33 = vadd.f32 %v2359_v54, %v604_v7  ;;  %v622_v32 = vmul.f32 %v610_v55, %v433_v9  ;;  %v623_v12 = vmul.f32 %v614_v10, %v434_v60  ;;  %v3628_v49 = vpop.eup %2362  ;;  %v832_v35 = vrot.slane %v2361_v6, %v3555_v19 }
 0x28a   : > { %v652_v52 = vmul.f32 %v647_v1, %v629_v36  ;;  %v624_v25 = vmul.f32 %v618_v38, %v435_v18  ;;  %v637_v16 = vrot.slane %v2359_v54, %v3577_v57  ;;  %2370 = vpow2.f32 %v1258_v29 }
 0x28b   : > { %v826_v56 = vmul.f32 %v2361_v6, %v605_v33  ;;  %v1478_v3 = vmul.f32 1.442695, %v1477_v27  ;;  %v653_v8 = vmul.f32 %v648_v34, %v633_v62  ;;  %2372 = vpow2.f32 %v1475_v0 }
 0x28c   : > { %v1692_v53 = vpop.permute.xlu1 %1691  ;;  %v655_v37 = vadd.f32 %v652_v52, %v622_v32  ;;  %1517 = vrot.lane.b32.xlu1 %v3422_v47, %s2415_s8  ;;  %v654_v15 = vmul.f32 %v3871_v30, %v637_v16  ;;  %v851_v26 = vrot.slane %v3628_v49, %v3555_v19  ;;  %v836_v47 = vrot.slane %v2361_v6, %v3558_v13 }
 0x28d   : > { %v827_v42 = vadd.f32 %v3628_v49, %v826_v56  ;;  %v1693_v1 = vrot.slane %v1692_v53, 1  ;;  %v656_v2 = vadd.f32 %v653_v8, %v623_v12  ;;  %v840_v63 = vrot.slane %v2361_v6, %v3577_v57 }
 0x28e   : > { %v844_v28 = vmul.f32 %v832_v35, %v655_v37  ;;  %v657_v50 = vadd.f32 %v654_v15, %v624_v25  ;;  %v2365_v31 = vpop.eup %2364  ;;  %2374 = vpow2.f32 %v1478_v3  ;;  %v859_v60 = vrot.slane %v3628_v49, %v3577_v57 }
 0x28f   : > { %v1694_v51 = vsel %vm367_vm5, %v1692_v53, %v1693_v1  ;;  %v845_v41 = vmul.f32 %v836_v47, %v656_v2  ;;  %v1057_v40 = vrot.slane %v2365_v31, %v3555_v19  ;;  %v1051_v54 = vmul.f32 %v2365_v31, %v827_v42 }
 0x290   : > { %v1696_v4 = vsel %vm1664_vm0, %v1694_v51, 0.0  ;;  %v866_v22 = vpop.permute.xlu1 %865  ;;  %1521 = vrot.lane.b32.xlu1 %v3445_v58, %s2415_s8  ;;  %v846_v44 = vmul.f32 %v840_v63, %v657_v50  ;;  %v855_v18 = vrot.slane %v3628_v49, %v3558_v13  ;;  %v1065_v0 = vrot.slane %v2365_v31, %v3577_v57 }
 0x291   : > { %v1697_v20 = vmax.f32 %v3593_v23, %v1696_v4  ;;  %v870_v11 = vsel %vm869_vm6, %v864_v43, %v866_v22  ;;  %v1061_v49 = vrot.slane %v2365_v31, %v3558_v13  ;;  %vm1523_vm8 = vcmask 547840  }
 0x292   : > { %v875_v14 = vmul.f32 %v870_v11, %v851_v26  ;;  %v3658_v7 = vpop.eup %2366  ;;  %vm1752_vm11 = vcmask 400384   ;;  %vm2199_vm14 = vcmask 384000  }
 0x293   : > { %v1698_v24 = vsub.f32 %v3593_v23, %v1697_v20  ;;  %v1701_v46 = vsub.f32 %v1696_v4, %v1697_v20  ;;  %v3660_v17 = vpop.eup %2368  ;;  %v1052_v23 = vadd.f32 %v3658_v7, %v1051_v54  ;;  %v1084_v21 = vrot.slane %v3658_v7, %v3577_v57 }
 0x294   : > { %v878_v61 = vadd.f32 %v875_v14, %v844_v28  ;;  %1746 = vrot.lane.b32.xlu1 %v3856_v39, %s2416_s9  ;;  %v1076_v14 = vrot.slane %v3658_v7, %v3555_v19  ;;  %v1266_v54 = vrot.slane %v3660_v17, %v3555_v19 }
 0x295   : > { %v1699_v9 = vmul.f32 1.442695, %v1698_v24  ;;  %v1702_v55 = vmul.f32 1.442695, %v1701_v46  ;;  %v1260_v34 = vmul.f32 %v3660_v17, %v1052_v23 }
 0x296   : > { %v3656_v58 = vmul.f32 %v1057_v40, %v878_v61 }
 0x297   : > { %2376 = vpow2.f32 %v1699_v9  ;;  %v3668_v10 = vpop.eup %2370  ;;  %v1080_v9 = vrot.slane %v3658_v7, %v3558_v13 }
 0x298   : > { %1750 = vrot.lane.b32.xlu1 %v1743_v45, %s2416_s9  ;;  %2378 = vpow2.f32 %v1702_v55  ;;  %v3673_v29 = vpop.eup %2372  ;;  %v1261_v6 = vadd.f32 %v3668_v10, %v1260_v34 }
 0x29a   : > { %v1918_v59 = vpop.permute.xlu0 %1917  ;;  %v1480_v52 = vmul.f32 %v3673_v29, %v1261_v6 }
 0x29b   : > { %v1919_v30 = vrot.slane %v1918_v59, 1  ;;  %v3685_v12 = vpop.eup %2374 }
 0x29c   : > { %1969 = vrot.lane.b32.xlu1 %v3856_v39, %s2417_s10  ;;  %v1481_v35 = vadd.f32 %v3685_v12, %v1480_v52 }
 0x29d   : > { %v1920_v36 = vsel %vm367_vm5, %v1918_v59, %v1919_v30 }
 0x29e   : > { %v1922_v33 = vsel %vm1890_vm9, %v1920_v36, 0.0  ;;  %v868_v32 = vpop.permute.xlu0 %867  ;;  %v1293_v36 = vrot.slane %v3668_v10, %v3577_v57 }
 0x29f   : > { %v1923_v38 = vmax.f32 %v1697_v20, %v1922_v33  ;;  %v871_v27 = vsel %vm869_vm6, %v866_v22, %v868_v32  ;;  %v877_v48 = vmul.f32 %v868_v32, %v859_v60 }
 0x2a0   : > { %v876_v56 = vmul.f32 %v871_v27, %v855_v18  ;;  %1973 = vrot.lane.b32.xlu1 %v1743_v45, %s2417_s10  ;;  %v1289_v27 = vrot.slane %v3668_v10, %v3558_v13 }
 0x2a1   : > { %v1924_v25 = vsub.f32 %v1697_v20, %v1923_v38  ;;  %v1927_v53 = vsub.f32 %v1922_v33, %v1923_v38  ;;  %v880_v37 = vadd.f32 %v877_v48, %v846_v44  ;;  %v1270_v33 = vrot.slane %v3660_v17, %v3558_v13 }
 0x2a2   : > { %v879_v62 = vadd.f32 %v876_v56, %v845_v41  ;;  %v1091_v22 = vpop.permute.xlu0 %1090 }
 0x2a3   : > { %v1925_v16 = vmul.f32 1.442695, %v1924_v25  ;;  %v1928_v42 = vmul.f32 1.442695, %v1927_v53  ;;  %v1071_v1 = vmul.f32 %v1065_v0, %v880_v37 }
 0x2a4   : > { %v3691_v3 = vpop.eup %2376  ;;  %v1070_v43 = vmul.f32 %v1061_v49, %v879_v62  ;;  %2193 = vrot.lane.b32.xlu1 %v3856_v39, %s2418_s11  ;;  %v1494_v49 = vrot.slane %v3673_v29, %v3577_v57 }
 0x2a5   : > { %2380 = vpow2.f32 %v1925_v16  ;;  %v1704_v28 = vmul.f32 %v3691_v3, %v1481_v35  ;;  %v3696_v8 = vpop.eup %2378 }
 0x2a6   : > { %2382 = vpow2.f32 %v1928_v42  ;;  %v1298_v39 = vpop.permute.xlu0 %1297 }
 0x2a7   : > { %v1705_v15 = vadd.f32 %v3696_v8, %v1704_v28 }
 0x2a8   : > { %2197 = vrot.lane.b32.xlu1 %v1743_v45, %s2418_s11 }
 0x2aa   : > { %v1302_v2 = vpop.permute.xlu0 %1301 }
 0x2ab   : > { %v1311_v32 = vmul.f32 %v1302_v2, %v1293_v36 }
 0x2ae   : > { %v1520_v31 = vpop.permute.xlu0 %1519 }
 0x2b2   : > { %v3700_v51 = vpop.eup %2380  ;;  %v1745_v55 = vpop.permute.xlu0 %1744 }
 0x2b3   : > { %v1930_v26 = vmul.f32 %v3700_v51, %v1705_v15  ;;  %v3703_v47 = vpop.eup %2382 }
 0x2b5   : > { %v3706_v4 = vadd.f32 %v3703_v47, %v1930_v26 }
 0x2b6   : > { %v1749_v35 = vpop.permute.xlu0 %1748 }
 0x2ee   : > { %v2142_v50 = vpop.permute.xlu1 %2141 }
 0x2ef   : > { %v2143_v63 = vrot.slane %v2142_v50, 1 }
 0x2f1   : > { %v2144_v20 = vsel %vm367_vm5, %v2142_v50, %v2143_v63  ;;  %vm1303_vm5 = vcmask 556032   ;;  %v1509_v63 = vrot.slane %v3685_v12, %v3558_v13 }
 0x2f2   : > { %v2146_v11 = vsel %vm2114_vm7, %v2144_v20, 0.0  ;;  %v1089_v41 = vpop.permute.xlu1 %1088 }
 0x2f3   : > { %v2147_v44 = vmax.f32 %v1923_v38, %v2146_v11  ;;  %v1095_v24 = vsel %vm1094_vm10, %v1089_v41, %v1091_v22 }
 0x2f4   : > { %v1100_v46 = vmul.f32 %v1095_v24, %v1076_v14  ;;  %v1968_v14 = vpop.permute.xlu0 %1967 }
 0x2f5   : > { %v2148_v5 = vsub.f32 %v1923_v38, %v2147_v44  ;;  %v2151_v61 = vsub.f32 %v2146_v11, %v2147_v44  ;;  %v1285_v38 = vrot.slane %v3668_v10, %v3555_v19  ;;  %v1505_v10 = vrot.slane %v3685_v12, %v3555_v19 }
 0x2f6   : > { %v1103_v40 = vadd.f32 %v1100_v46, %v3656_v58  ;;  %v1093_v45 = vpop.permute.xlu1 %1092  ;;  %v1274_v58 = vrot.slane %v3660_v17, %v3577_v57  ;;  %v1486_v17 = vrot.slane %v3673_v29, %v3555_v19  ;;  %v1711_v11 = vrot.slane %v3691_v3, %v3555_v19 }
 0x2f7   : > { %v2149_v23 = vmul.f32 1.442695, %v2148_v5  ;;  %v2152_v59 = vmul.f32 1.442695, %v2151_v61  ;;  %v1096_v30 = vsel %vm1094_vm10, %v1091_v22, %v1093_v45  ;;  %v1102_v34 = vmul.f32 %v1093_v45, %v1084_v21 }
 0x2f8   : > { %v1101_v60 = vmul.f32 %v1096_v30, %v1080_v9  ;;  %v1278_v6 = vmul.f32 %v1266_v54, %v1103_v40  ;;  %v1719_v46 = vrot.slane %v3691_v3, %v3577_v57  ;;  %v1730_v40 = vrot.slane %v3696_v8, %v3555_v19 }
 0x2f9   : > { %2384 = vpow2.f32 %v2149_v23  ;;  %v1105_v7 = vadd.f32 %v1102_v34, %v1071_v1  ;;  %v1734_v9 = vrot.slane %v3696_v8, %v3558_v13 }
 0x2fa   : > { %v1104_v18 = vadd.f32 %v1101_v60, %v1070_v43  ;;  %v1300_v48 = vpop.permute.xlu1 %1299  ;;  %2386 = vpow2.f32 %v2152_v59  ;;  %v1490_v43 = vrot.slane %v3673_v29, %v3558_v13 }
 0x2fb   : > { %v1280_v52 = vmul.f32 %v1274_v58, %v1105_v7  ;;  %v1304_v56 = vsel %vm1303_vm5, %v1298_v39, %v1300_v48  ;;  %v1305_v0 = vsel %vm1303_vm5, %v1300_v48, %v1302_v2  ;;  %v1513_v2 = vrot.slane %v3685_v12, %v3577_v57 }
 0x2fc   : > { %v1279_v25 = vmul.f32 %v1270_v33, %v1104_v18  ;;  %v1309_v53 = vmul.f32 %v1304_v56, %v1285_v38  ;;  %v1310_v37 = vmul.f32 %v1305_v0, %v1289_v27  ;;  %v1715_v12 = vrot.slane %v3691_v3, %v3558_v13  ;;  %v1972_v3 = vpop.permute.xlu0 %1971 }
 0x2fd   : > { %v1314_v62 = vadd.f32 %v1311_v32, %v1280_v52  ;;  %v1959_v56 = vrot.slane %v3703_v47, %v3558_v13 }
 0x2fe   : > { %v1312_v16 = vadd.f32 %v1309_v53, %v1278_v6  ;;  %v1313_v42 = vadd.f32 %v1310_v37, %v1279_v25  ;;  %v1518_v1 = vpop.permute.xlu1 %1517  ;;  %v1738_v6 = vrot.slane %v3696_v8, %v3577_v57  ;;  %v1955_v8 = vrot.slane %v3703_v47, %v3555_v19 }
 0x2ff   : > { %v1524_v28 = vsel %vm1523_vm8, %v1518_v1, %v1520_v31  ;;  %v1500_v15 = vmul.f32 %v1494_v49, %v1314_v62  ;;  %v1944_v53 = vrot.slane %v3700_v51, %v3577_v57 }
 0x300   : > { %v1498_v26 = vmul.f32 %v1486_v17, %v1312_v16  ;;  %v1529_v22 = vmul.f32 %v1524_v28, %v1505_v10  ;;  %v1499_v39 = vmul.f32 %v1490_v43, %v1313_v42  ;;  %v2192_v25 = vpop.permute.xlu0 %2191  ;;  %v1963_v16 = vrot.slane %v3703_v47, %v3577_v57 }
 0x302   : > { %v1532_v50 = vadd.f32 %v1529_v22, %v1498_v26  ;;  %v1522_v20 = vpop.permute.xlu1 %1521 }
 0x303   : > { %v1525_v29 = vsel %vm1523_vm8, %v1520_v31, %v1522_v20  ;;  %v1531_v41 = vmul.f32 %v1522_v20, %v1513_v2 }
 0x304   : > { %v1530_v44 = vmul.f32 %v1525_v29, %v1509_v63  ;;  %v1723_v24 = vmul.f32 %v1711_v11, %v1532_v50  ;;  %v2196_v26 = vpop.permute.xlu0 %2195 }
 0x305   : > { %v1534_v5 = vadd.f32 %v1531_v41, %v1500_v15 }
 0x306   : > { %v2385_v61 = vpop.eup %2384  ;;  %v1533_v21 = vadd.f32 %v1530_v44, %v1499_v39  ;;  %v1747_v31 = vpop.permute.xlu1 %1746 }
 0x307   : > { %v1725_v45 = vmul.f32 %v1719_v46, %v1534_v5  ;;  %v1753_v54 = vsel %vm1752_vm11, %v1745_v55, %v1747_v31  ;;  %v1754_v23 = vsel %vm1752_vm11, %v1747_v31, %v1749_v35  ;;  %v2154_v59 = vmul.f32 %v2385_v61, %v3706_v4  ;;  %v3763_v30 = vpop.eup %2386 }
 0x308   : > { %v1724_v34 = vmul.f32 %v1715_v12, %v1533_v21  ;;  %v1759_v36 = vmul.f32 %v1753_v54, %v1730_v40  ;;  %v1760_v60 = vmul.f32 %v1754_v23, %v1734_v9  ;;  %v1936_v55 = vrot.slane %v3700_v51, %v3555_v19 }
 0x309   : > { %v2155_v58 = vadd.f32 %v3763_v30, %v2154_v59  ;;  %v1940_v4 = vrot.slane %v3700_v51, %v3558_v13  ;;  %v2160_v43 = vrot.slane %v2385_v61, %v3555_v19  ;;  %v2164_v28 = vrot.slane %v2385_v61, %v3558_v13 }
 0x30a   : > { %v1762_v7 = vadd.f32 %v1759_v36, %v1723_v24  ;;  %v1763_v33 = vadd.f32 %v1760_v60, %v1724_v34  ;;  %v1751_v32 = vpop.permute.xlu1 %1750  ;;  %v2179_v50 = vrot.slane %v3763_v30, %v3555_v19  ;;  %v2183_v47 = vrot.slane %v3763_v30, %v3558_v13 }
 0x30b   : > { %v1755_v18 = vsel %vm1752_vm11, %v1749_v35, %v1751_v32  ;;  %2388 = vrcp.f32 %v2155_v58  ;;  %v2168_v20 = vrot.slane %v2385_v61, %v3577_v57  ;;  %v2187_v40 = vrot.slane %v3763_v30, %v3577_v57 }
 0x30c   : > { %v1761_v38 = vmul.f32 %v1755_v18, %v1738_v6  ;;  %v1948_v27 = vmul.f32 %v1936_v55, %v1762_v7  ;;  %v1949_v48 = vmul.f32 %v1940_v4, %v1763_v33 }
 0x30e   : > { %v1764_v52 = vadd.f32 %v1761_v38, %v1725_v45  ;;  %v1970_v0 = vpop.permute.xlu1 %1969 }
 0x30f   : > { %v1976_v37 = vsel %vm1975_vm13, %v1968_v14, %v1970_v0  ;;  %v1977_v35 = vsel %vm1975_vm13, %v1970_v0, %v1972_v3 }
 0x310   : > { %v1982_v17 = vmul.f32 %v1976_v37, %v1955_v8  ;;  %v1983_v62 = vmul.f32 %v1977_v35, %v1959_v56  ;;  %v1950_v49 = vmul.f32 %v1944_v53, %v1764_v52 }
 0x312   : > { %v1985_v42 = vadd.f32 %v1982_v17, %v1948_v27  ;;  %v1986_v10 = vadd.f32 %v1983_v62, %v1949_v48  ;;  %v1974_v1 = vpop.permute.xlu1 %1973 }
 0x313   : > { %v1978_v15 = vsel %vm1975_vm13, %v1972_v3, %v1974_v1 }
 0x314   : > { %v1984_v51 = vmul.f32 %v1978_v15, %v1963_v16  ;;  %v2172_v22 = vmul.f32 %v2160_v43, %v1985_v42  ;;  %v2173_v39 = vmul.f32 %v2164_v28, %v1986_v10 }
 0x316   : > { %v1987_v2 = vadd.f32 %v1984_v51, %v1950_v49  ;;  %v2194_v63 = vpop.permute.xlu1 %2193 }
 0x317   : > { %v2200_v11 = vsel %vm2199_vm14, %v2192_v25, %v2194_v63  ;;  %v2201_v14 = vsel %vm2199_vm14, %v2194_v63, %v2196_v26 }
 0x318   : > { %v2389_v29 = vpop.eup %2388  ;;  %v2206_v41 = vmul.f32 %v2200_v11, %v2179_v50  ;;  %v2207_v44 = vmul.f32 %v2201_v14, %v2183_v47  ;;  %v2174_v24 = vmul.f32 %v2168_v20, %v1987_v2 }
 0x319   : > { %v2218_v46 = vrot.slane %v2389_v29, %v3555_v19  ;;  %v2222_v5 = vrot.slane %v2389_v29, %v3558_v13  ;;  %v2226_v19 = vrot.slane %v2389_v29, %v3577_v57 }
 0x31a   : > { %v2209_v21 = vadd.f32 %v2206_v41, %v2172_v22  ;;  %v2210_v12 = vadd.f32 %v2207_v44, %v2173_v39  ;;  %v2198_v9 = vpop.permute.xlu1 %2197 }
 0x31b   : > { %v2202_v61 = vsel %vm2199_vm14, %v2196_v26, %v2198_v9 }
 0x31c   : > { %v2230_v31 = vmul.f32 %v2218_v46, %v2209_v21  ;;  %v2231_v45 = vmul.f32 %v2222_v5, %v2210_v12  ;;  %v2208_v54 = vmul.f32 %v2202_v61, %v2187_v40 }
 0x31e   : > { %v2235_v23 = vcombine.low %v2230_v31, %v2231_v45  ;;  %v2211_v59 = vadd.f32 %v2208_v54, %v2174_v24 }
 0x320   : > { %2237 = vst [vmem:[%s190_s21] sm:$0xff] %v2235_v23  ;;  %v2232_v13 = vmul.f32 %v2226_v19, %v2211_v59 }
 0x322   : > { %2239 = vst.msk [vmem:[%s190_s21 + $0x8] sm:$0xf] %vm2238_vm15, %v2232_v13 }
 0x323 PF: > { %s13_s12 = sadd.s32 1, %s2398_s12  }
 0x324   : > { %p10_p4 = scmp.ge.s32.totalorder %s13_s12, 4  }
 0x326   :  { %12 = sbr.rel (!%p10_p4) target bundleno = 1 (0x1), region = 66 }

</bundles_post_ra>
